<compile_context>
chip_gen: v7x
topology: tpu7x:2x2x1
jax: 0.10.0
libtpu: 0.0.40
codegen_flags: <defaults>
</compile_context>

<pallas_src>
import jax
import jax.numpy as jnp
from jax.experimental import pallas as pl
from jax.experimental.pallas import tpu as pltpu


def _round_up(v, m):
    return ((v + m - 1) // m) * m


# ----------------------------- Pallas kernels --------------------------------
def _sage_layer1_kernel(adj_ref, xs_ref, xd_ref, w1_ref, b1_ref,
                        w2l_ref, w2r_ref, b2_ref, z_ref, r_ref, acc_ref):
    """Layer 1 (+ fused layer-2 projections) for one destination-node tile.

    acc scratch layout: (TM, 2*F_pad) f32 = [ running A@x | x_dst (self) ].
    """
    k = pl.program_id(1)
    f_pad = xs_ref.shape[1]

    @pl.when(k == 0)
    def _init():
        acc_ref[...] = jnp.zeros_like(acc_ref)
        # self features occupy the second half of the fused [agg | x_dst] operand
        acc_ref[:, f_pad:] = xd_ref[...].astype(jnp.float32)

    # mean aggregation over this source tile (bf16 MXU, f32 accumulation)
    acc_ref[:, :f_pad] += jnp.dot(adj_ref[...], xs_ref[...],
                                  preferred_element_type=jnp.float32)

    @pl.when(k == pl.num_programs(1) - 1)
    def _finalize():
        both = acc_ref[...].astype(jnp.bfloat16)                 # (TM, 2*F_pad)
        # single fused matmul against stacked [W1_l ; W1_r]
        h = jnp.dot(both, w1_ref[...], preferred_element_type=jnp.float32)
        h = jnp.maximum(h + b1_ref[...], 0.0)                    # conv1 + ReLU
        # TODO(synk): dropout(p=0.2) would go here in training mode (identity in eval).
        hb = h.astype(jnp.bfloat16)
        # layer-2 projections done here (project-before-aggregate), h stays in VMEM
        z_ref[...] = jnp.dot(hb, w2l_ref[...],
                             preferred_element_type=jnp.float32).astype(z_ref.dtype)
        r_ref[...] = (jnp.dot(hb, w2r_ref[...],
                              preferred_element_type=jnp.float32)
                      + b2_ref[...]).astype(r_ref.dtype)


def _sage_layer2_kernel(adj_ref, z_ref, r_ref, y_ref, acc_ref):
    """Layer 2 aggregation: y = A @ z + r (z already projected by layer-1 kernel)."""
    k = pl.program_id(1)

    @pl.when(k == 0)
    def _init():
        acc_ref[...] = jnp.zeros_like(acc_ref)

    acc_ref[...] += jnp.dot(adj_ref[...], z_ref[...],
                            preferred_element_type=jnp.float32)

    @pl.when(k == pl.num_programs(1) - 1)
    def _finalize():
        y_ref[...] = (acc_ref[...] + r_ref[...]).astype(y_ref.dtype)


# ------------------------------- Wrappers ------------------------------------
_VMEM_LIMIT = 32 * 1024 * 1024  # safe on v5e/v6e/v7x; tiles here need far less


def _layer1_call(adj, x, w1, b1, w2l, w2r, b2, *, tm, tk):
    n_pad = adj.shape[0]
    f_pad = x.shape[1]
    h_pad = w1.shape[1]
    o_pad = w2l.shape[1]
    grid = (n_pad // tm, n_pad // tk)

    flops = (2 * n_pad * n_pad * f_pad            # A @ x
             + 2 * n_pad * (2 * f_pad) * h_pad    # fused [agg|x] @ [W1_l;W1_r]
             + 4 * n_pad * h_pad * o_pad)         # h @ W2_l and h @ W2_r
    bytes_accessed = (adj.size * 2 + 2 * x.size * 2 + w1.size * 2
                      + 2 * w2l.size * 2 + n_pad * o_pad * (2 + 4))

    return pl.pallas_call(
        _sage_layer1_kernel,
        out_shape=(jax.ShapeDtypeStruct((n_pad, o_pad), jnp.bfloat16),   # z
                   jax.ShapeDtypeStruct((n_pad, o_pad), jnp.float32)),   # r
        grid_spec=pltpu.PrefetchScalarGridSpec(
            num_scalar_prefetch=0,
            grid=grid,
            in_specs=[
                pl.BlockSpec((tm, tk), lambda i, k: (i, k)),             # adj tile
                pl.BlockSpec((tk, f_pad), lambda i, k: (k, 0)),          # x (source rows)
                pl.BlockSpec((tm, f_pad), lambda i, k: (i, 0)),          # x (dest / self rows)
                pl.BlockSpec((2 * f_pad, h_pad), lambda i, k: (0, 0)),   # stacked W1
                pl.BlockSpec((1, h_pad), lambda i, k: (0, 0)),           # b1
                pl.BlockSpec((h_pad, o_pad), lambda i, k: (0, 0)),       # W2_l
                pl.BlockSpec((h_pad, o_pad), lambda i, k: (0, 0)),       # W2_r
                pl.BlockSpec((1, o_pad), lambda i, k: (0, 0)),           # b2
            ],
            out_specs=(pl.BlockSpec((tm, o_pad), lambda i, k: (i, 0)),
                       pl.BlockSpec((tm, o_pad), lambda i, k: (i, 0))),
            scratch_shapes=[pltpu.VMEM((tm, 2 * f_pad), jnp.float32)],
        ),
        compiler_params=pltpu.CompilerParams(
            dimension_semantics=("parallel", "arbitrary"),
            vmem_limit_bytes=_VMEM_LIMIT),
        cost_estimate=pl.CostEstimate(flops=flops, transcendentals=0,
                                      bytes_accessed=bytes_accessed),
    )(adj, x, x, w1, b1, w2l, w2r, b2)


def _layer2_call(adj, z, r, *, tm, tk):
    n_pad = adj.shape[0]
    o_pad = z.shape[1]
    grid = (n_pad // tm, n_pad // tk)

    flops = 2 * n_pad * n_pad * o_pad
    bytes_accessed = adj.size * 2 + z.size * 2 + r.size * 4 + n_pad * o_pad * 4

    return pl.pallas_call(
        _sage_layer2_kernel,
        out_shape=jax.ShapeDtypeStruct((n_pad, o_pad), jnp.float32),
        grid_spec=pltpu.PrefetchScalarGridSpec(
            num_scalar_prefetch=0,
            grid=grid,
            in_specs=[
                pl.BlockSpec((tm, tk), lambda i, k: (i, k)),        # adj tile
                pl.BlockSpec((tk, o_pad), lambda i, k: (k, 0)),     # z (source rows)
                pl.BlockSpec((tm, o_pad), lambda i, k: (i, 0)),     # r (dest rows)
            ],
            out_specs=pl.BlockSpec((tm, o_pad), lambda i, k: (i, 0)),
            scratch_shapes=[pltpu.VMEM((tm, o_pad), jnp.float32)],
        ),
        compiler_params=pltpu.CompilerParams(
            dimension_semantics=("parallel", "arbitrary"),
            vmem_limit_bytes=_VMEM_LIMIT),
        cost_estimate=pl.CostEstimate(flops=flops, transcendentals=0,
                                      bytes_accessed=bytes_accessed),
    )(adj, z, r)


# ------------------------------- Glue (JAX) -----------------------------------
def build_mean_adjacency(edge_index, num_nodes):
    """Dense row-normalized adjacency: A[i, j] = 1/deg(i) if edge j->i exists."""
    src = edge_index[0]
    dst = edge_index[1]
    a = jnp.zeros((num_nodes, num_nodes), jnp.float32)
    a = a.at[dst, src].add(1.0)
    deg = jnp.sum(a, axis=1, keepdims=True)
    a = a / jnp.maximum(deg, 1.0)          # nodes with no in-edges aggregate to 0
    return a


def graphsage_forward(x, edge_index, params, *, tm=128, tk=128, lane=128):
    n, f_in = x.shape
    hidden = params["w1_l"].shape[1]

    n_pad = _round_up(n, max(tm, tk))
    f_pad = _round_up(f_in, lane)
    h_pad = _round_up(hidden, lane)
    o_pad = lane                          # final channel (=1) padded -> lane-dense stores

    adj = build_mean_adjacency(edge_index, n)
    adj_p = jnp.pad(adj, ((0, n_pad - n), (0, n_pad - n))).astype(jnp.bfloat16)
    x_p = jnp.pad(x, ((0, n_pad - n), (0, f_pad - f_in))).astype(jnp.bfloat16)

    # stacked + zero-padded weights (bf16 MXU operands), f32 biases
    w1 = jnp.zeros((2 * f_pad, h_pad), jnp.float32)
    w1 = w1.at[:f_in, :hidden].set(params["w1_l"])
    w1 = w1.at[f_pad:f_pad + f_in, :hidden].set(params["w1_r"])
    w1 = w1.astype(jnp.bfloat16)
    b1 = jnp.zeros((1, h_pad), jnp.float32).at[:, :hidden].set(params["b1_l"])

    w2l = jnp.zeros((h_pad, o_pad), jnp.float32).at[:hidden, :1].set(params["w2_l"]).astype(jnp.bfloat16)
    w2r = jnp.zeros((h_pad, o_pad), jnp.float32).at[:hidden, :1].set(params["w2_r"]).astype(jnp.bfloat16)
    b2 = jnp.zeros((1, o_pad), jnp.float32).at[:, :1].set(params["b2_l"])

    z, r = _layer1_call(adj_p, x_p, w1, b1, w2l, w2r, b2, tm=tm, tk=tk)
    y = _layer2_call(adj_p, z, r, tm=tm, tk=tk)
    return y[:n, 0]                        # matches x.view(-1)


def init_params(key, in_channels, hidden_channels):
    """Deterministic synthetic parameters (SAGEConv: lin_l with bias, lin_r no bias)."""
    ks = jax.random.split(key, 6)
    s1 = 1.0 / jnp.sqrt(jnp.float32(in_channels))
    s2 = 1.0 / jnp.sqrt(jnp.float32(hidden_channels))
    return {
        "w1_l": jax.random.uniform(ks[0], (in_channels, hidden_channels), jnp.float32, -s1, s1),
        "w1_r": jax.random.uniform(ks[1], (in_channels, hidden_channels), jnp.float32, -s1, s1),
        "b1_l": jax.random.uniform(ks[2], (1, hidden_channels), jnp.float32, -s1, s1),
        "w2_l": jax.random.uniform(ks[3], (hidden_channels, 1), jnp.float32, -s2, s2),
        "w2_r": jax.random.uniform(ks[4], (hidden_channels, 1), jnp.float32, -s2, s2),
        "b2_l": jax.random.uniform(ks[5], (1, 1), jnp.float32, -s2, s2),
    }


if __name__ == "__main__":
    key = jax.random.PRNGKey(0)
    k_x, k_e, k_p = jax.random.split(key, 3)

    num_nodes = 200          # pads to 256 -> 2x2 grid of 128x128 adjacency tiles
    in_channels = 8
    hidden_channels = 32
    num_edges = 800

    x = jax.random.normal(k_x, (num_nodes, in_channels), jnp.float32)
    edge_index = jax.random.randint(k_e, (2, num_edges), 0, num_nodes, jnp.int32)
    params = init_params(k_p, in_channels, hidden_channels)

    out = jax.jit(graphsage_forward)(x, edge_index, params)
    out = jax.block_until_ready(out)
    assert out.shape == (num_nodes,), out.shape

    # pure-JAX reference mirroring the kernel's bf16-operand / f32-accumulate math
    bf = lambda a: a.astype(jnp.bfloat16).astype(jnp.float32)
    adj = build_mean_adjacency(edge_index, num_nodes)
    adj_b, x_b = bf(adj), bf(x)
    agg = bf(adj_b @ x_b)
    h = jnp.maximum(agg @ bf(params["w1_l"]) + x_b @ bf(params["w1_r"]) + params["b1_l"], 0.0)
    hb = bf(h)
    z_ref = bf(hb @ bf(params["w2_l"]))
    r_ref = hb @ bf(params["w2_r"]) + params["b2_l"]
    y_ref = (adj_b @ z_ref + r_ref).reshape(-1)
    assert jnp.allclose(out, y_ref, atol=1e-2, rtol=1e-2), float(jnp.max(jnp.abs(out - y_ref)))

    print("KERNEL_OK")
</pallas_src>

<mosaic_0001>
module attributes {stable_mosaic.version = 11 : i64} {
  func.func private @main(%arg0: i32) attributes {dimension_semantics = [#tpu.dimension_semantics<core_parallel>], iteration_bounds = array<i64: 2>, tpu.core_type = #tpu.core_type<sc_scalar_subcore>, window_params = []} {
    return
  }
}

module attributes {stable_mosaic.version = 11 : i64} {
  func.func private @main(%arg0: i32) attributes {dimension_semantics = [#tpu.dimension_semantics<core_parallel>], iteration_bounds = array<i64: 2>, tpu.core_type = #tpu.core_type<sc_scalar_subcore>, window_params = []} {
    return
  }
}

module attributes {stable_mosaic.version = 11 : i64} {
  func.func @_sage_layer2_kernel(%arg0: i32, %arg1: i32, %arg2: memref<128x128xbf16, #tpu.memory_space<vmem>>, %arg3: memref<128x128xbf16, #tpu.memory_space<vmem>>, %arg4: memref<128x128xf32, #tpu.memory_space<vmem>>, %arg5: memref<128x128xf32, #tpu.memory_space<vmem>>, %arg6: memref<128x128xf32, #tpu.memory_space<vmem>>) attributes {dimension_semantics = [#tpu.dimension_semantics<parallel>, #tpu.dimension_semantics<arbitrary>], iteration_bounds = array<i64: 2, 2>, scalar_prefetch = 0 : i64, scratch_operands = 1 : i64, tpu.core_type = #tpu.core_type<tc>, window_params = [{transform_indices = @transform_0, window_bounds = array<i64: 128, 128>}, {transform_indices = @transform_1, window_bounds = array<i64: 128, 128>}, {transform_indices = @transform_2, window_bounds = array<i64: 128, 128>}, {transform_indices = @transform_3, window_bounds = array<i64: 128, 128>}]} {
    %c0_i32 = arith.constant 0 : i32
    %0 = arith.cmpi eq, %arg1, %c0_i32 : i32
    %1 = arith.extui %0 : i1 to i32
    %c0_i32_0 = arith.constant 0 : i32
    %2 = arith.cmpi ne, %1, %c0_i32_0 : i32
    scf.if %2 {
      %cst_9 = arith.constant 0.000000e+00 : f32
      %12 = vector.broadcast %cst_9 : f32 to vector<128x128xf32>
      %c0_10 = arith.constant 0 : index
      %c0_11 = arith.constant 0 : index
      %13 = vector.load %arg6[%c0_10, %c0_11] : memref<128x128xf32, #tpu.memory_space<vmem>>, vector<128x128xf32>
      tpu.vector_store %arg6[%c0_10, %c0_11], %12 {strides = array<i32>} : memref<128x128xf32, #tpu.memory_space<vmem>>, vector<128x128xf32>,
    } else {
    }
    %c0 = arith.constant 0 : index
    %c0_1 = arith.constant 0 : index
    %3 = vector.load %arg6[%c0, %c0_1] : memref<128x128xf32, #tpu.memory_space<vmem>>, vector<128x128xf32>
    %c0_2 = arith.constant 0 : index
    %c0_3 = arith.constant 0 : index
    %4 = vector.load %arg2[%c0_2, %c0_3] : memref<128x128xbf16, #tpu.memory_space<vmem>>, vector<128x128xbf16>
    %c0_4 = arith.constant 0 : index
    %c0_5 = arith.constant 0 : index
    %5 = vector.load %arg3[%c0_4, %c0_5] : memref<128x128xbf16, #tpu.memory_space<vmem>>, vector<128x128xbf16>
    %cst = arith.constant dense<0.000000e+00> : vector<128x128xf32>
    %6 = tpu.matmul %4, %5, %cst {dimension_numbers = #tpu.dot_dimension_numbers<[1], [0], [0], [1], [0, 0, 1, 1], [], []>} : vector<128x128xbf16>, vector<128x128xbf16>, vector<128x128xf32> -> vector<128x128xf32>
    %7 = arith.addf %3, %6 : vector<128x128xf32>
    %c0_6 = arith.constant 0 : index
    %c0_7 = arith.constant 0 : index
    %8 = vector.load %arg6[%c0_6, %c0_7] : memref<128x128xf32, #tpu.memory_space<vmem>>, vector<128x128xf32>
    tpu.vector_store %arg6[%c0_6, %c0_7], %7 {strides = array<i32>} : memref<128x128xf32, #tpu.memory_space<vmem>>, vector<128x128xf32>,
    %c1_i32 = arith.constant 1 : i32
    %9 = arith.cmpi eq, %arg1, %c1_i32 : i32
    %10 = arith.extui %9 : i1 to i32
    %c0_i32_8 = arith.constant 0 : i32
    %11 = arith.cmpi ne, %10, %c0_i32_8 : i32
    scf.if %11 {
      %c0_9 = arith.constant 0 : index
      %c0_10 = arith.constant 0 : index
      %12 = vector.load %arg6[%c0_9, %c0_10] : memref<128x128xf32, #tpu.memory_space<vmem>>, vector<128x128xf32>
      %c0_11 = arith.constant 0 : index
      %c0_12 = arith.constant 0 : index
      %13 = vector.load %arg4[%c0_11, %c0_12] : memref<128x128xf32, #tpu.memory_space<vmem>>, vector<128x128xf32>
      %14 = arith.addf %12, %13 : vector<128x128xf32>
      %c0_13 = arith.constant 0 : index
      %c0_14 = arith.constant 0 : index
      %15 = vector.load %arg5[%c0_13, %c0_14] : memref<128x128xf32, #tpu.memory_space<vmem>>, vector<128x128xf32>
      tpu.vector_store %arg5[%c0_13, %c0_14], %14 {strides = array<i32>} : memref<128x128xf32, #tpu.memory_space<vmem>>, vector<128x128xf32>,
    } else {
    }
    return
  }
  func.func @transform_0(%arg0: i32, %arg1: i32) -> (i32, i32) {
    %c0_i32 = arith.constant 0 : i32
    return %arg0, %arg1 : i32, i32
  }
  func.func @transform_1(%arg0: i32, %arg1: i32) -> (i32, i32) {
    %c0_i32 = arith.constant 0 : i32
    %c0_i32_0 = arith.constant 0 : i32
    return %arg1, %c0_i32 : i32, i32
  }
  func.func @transform_2(%arg0: i32, %arg1: i32) -> (i32, i32) {
    %c0_i32 = arith.constant 0 : i32
    %c0_i32_0 = arith.constant 0 : i32
    return %arg0, %c0_i32 : i32, i32
  }
  func.func @transform_3(%arg0: i32, %arg1: i32) -> (i32, i32) {
    %c0_i32 = arith.constant 0 : i32
    %c0_i32_0 = arith.constant 0 : i32
    return %arg0, %c0_i32 : i32, i32
  }
}

module attributes {stable_mosaic.version = 11 : i64} {
  func.func @_sage_layer1_kernel(%arg0: i32, %arg1: i32, %arg2: memref<128x128xbf16, #tpu.memory_space<vmem>>, %arg3: memref<128x128xbf16, #tpu.memory_space<vmem>>, %arg4: memref<128x128xbf16, #tpu.memory_space<vmem>>, %arg5: memref<256x128xbf16, #tpu.memory_space<vmem>>, %arg6: memref<1x128xf32, #tpu.memory_space<vmem>>, %arg7: memref<128x128xbf16, #tpu.memory_space<vmem>>, %arg8: memref<128x128xbf16, #tpu.memory_space<vmem>>, %arg9: memref<1x128xf32, #tpu.memory_space<vmem>>, %arg10: memref<128x128xbf16, #tpu.memory_space<vmem>>, %arg11: memref<128x128xf32, #tpu.memory_space<vmem>>, %arg12: memref<128x256xf32, #tpu.memory_space<vmem>>) attributes {dimension_semantics = [#tpu.dimension_semantics<parallel>, #tpu.dimension_semantics<arbitrary>], iteration_bounds = array<i64: 2, 2>, scalar_prefetch = 0 : i64, scratch_operands = 1 : i64, tpu.core_type = #tpu.core_type<tc>, window_params = [{transform_indices = @transform_0, window_bounds = array<i64: 128, 128>}, {transform_indices = @transform_1, window_bounds = array<i64: 128, 128>}, {transform_indices = @transform_2, window_bounds = array<i64: 128, 128>}, {pipeline_mode = #tpu.pipeline_mode<synchronous>, transform_indices = @transform_3, window_bounds = array<i64: 256, 128>}, {pipeline_mode = #tpu.pipeline_mode<synchronous>, transform_indices = @transform_4, window_bounds = array<i64: 1, 128>}, {pipeline_mode = #tpu.pipeline_mode<synchronous>, transform_indices = @transform_5, window_bounds = array<i64: 128, 128>}, {pipeline_mode = #tpu.pipeline_mode<synchronous>, transform_indices = @transform_6, window_bounds = array<i64: 128, 128>}, {pipeline_mode = #tpu.pipeline_mode<synchronous>, transform_indices = @transform_7, window_bounds = array<i64: 1, 128>}, {transform_indices = @transform_8, window_bounds = array<i64: 128, 128>}, {transform_indices = @transform_9, window_bounds = array<i64: 128, 128>}]} {
    %c0_i32 = arith.constant 0 : i32
    %0 = arith.cmpi eq, %arg1, %c0_i32 : i32
    %1 = arith.extui %0 : i1 to i32
    %c0_i32_0 = arith.constant 0 : i32
    %2 = arith.cmpi ne, %1, %c0_i32_0 : i32
    scf.if %2 {
      %cst_9 = arith.constant 0.000000e+00 : f32
      %12 = vector.broadcast %cst_9 : f32 to vector<128x256xf32>
      %c0_10 = arith.constant 0 : index
      %c0_11 = arith.constant 0 : index
      %13 = vector.load %arg12[%c0_10, %c0_11] : memref<128x256xf32, #tpu.memory_space<vmem>>, vector<128x256xf32>
      tpu.vector_store %arg12[%c0_10, %c0_11], %12 {strides = array<i32>} : memref<128x256xf32, #tpu.memory_space<vmem>>, vector<128x256xf32>,
      %c0_12 = arith.constant 0 : index
      %c0_13 = arith.constant 0 : index
      %14 = vector.load %arg4[%c0_12, %c0_13] : memref<128x128xbf16, #tpu.memory_space<vmem>>, vector<128x128xbf16>
      %15 = arith.extf %14 : vector<128x128xbf16> to vector<128x128xf32>
      %c0_14 = arith.constant 0 : index
      %c128 = arith.constant 128 : index
      %16 = vector.load %arg12[%c0_14, %c128] : memref<128x256xf32, #tpu.memory_space<vmem>>, vector<128x128xf32>
      tpu.vector_store %arg12[%c0_14, %c128], %15 {strides = array<i32>} : memref<128x256xf32, #tpu.memory_space<vmem>>, vector<128x128xf32>,
    } else {
    }
    %c0 = arith.constant 0 : index
    %c0_1 = arith.constant 0 : index
    %3 = vector.load %arg12[%c0, %c0_1] : memref<128x256xf32, #tpu.memory_space<vmem>>, vector<128x128xf32>
    %c0_2 = arith.constant 0 : index
    %c0_3 = arith.constant 0 : index
    %4 = vector.load %arg2[%c0_2, %c0_3] : memref<128x128xbf16, #tpu.memory_space<vmem>>, vector<128x128xbf16>
    %c0_4 = arith.constant 0 : index
    %c0_5 = arith.constant 0 : index
    %5 = vector.load %arg3[%c0_4, %c0_5] : memref<128x128xbf16, #tpu.memory_space<vmem>>, vector<128x128xbf16>
    %cst = arith.constant dense<0.000000e+00> : vector<128x128xf32>
    %6 = tpu.matmul %4, %5, %cst {dimension_numbers = #tpu.dot_dimension_numbers<[1], [0], [0], [1], [0, 0, 1, 1], [], []>} : vector<128x128xbf16>, vector<128x128xbf16>, vector<128x128xf32> -> vector<128x128xf32>
    %7 = arith.addf %3, %6 : vector<128x128xf32>
    %c0_6 = arith.constant 0 : index
    %c0_7 = arith.constant 0 : index
    %8 = vector.load %arg12[%c0_6, %c0_7] : memref<128x256xf32, #tpu.memory_space<vmem>>, vector<128x128xf32>
    tpu.vector_store %arg12[%c0_6, %c0_7], %7 {strides = array<i32>} : memref<128x256xf32, #tpu.memory_space<vmem>>, vector<128x128xf32>,
    %c1_i32 = arith.constant 1 : i32
    %9 = arith.cmpi eq, %arg1, %c1_i32 : i32
    %10 = arith.extui %9 : i1 to i32
    %c0_i32_8 = arith.constant 0 : i32
    %11 = arith.cmpi ne, %10, %c0_i32_8 : i32
    scf.if %11 {
      %c0_9 = arith.constant 0 : index
      %c0_10 = arith.constant 0 : index
      %12 = vector.load %arg12[%c0_9, %c0_10] : memref<128x256xf32, #tpu.memory_space<vmem>>, vector<128x256xf32>
      %13 = arith.truncf %12 : vector<128x256xf32> to vector<128x256xbf16>
      %c0_11 = arith.constant 0 : index
      %c0_12 = arith.constant 0 : index
      %14 = vector.load %arg5[%c0_11, %c0_12] : memref<256x128xbf16, #tpu.memory_space<vmem>>, vector<256x128xbf16>
      %cst_13 = arith.constant dense<0.000000e+00> : vector<128x128xf32>
      %15 = tpu.matmul %13, %14, %cst_13 {dimension_numbers = #tpu.dot_dimension_numbers<[1], [0], [0], [1], [0, 0, 1, 1], [], []>} : vector<128x256xbf16>, vector<256x128xbf16>, vector<128x128xf32> -> vector<128x128xf32>
      %c0_14 = arith.constant 0 : index
      %c0_15 = arith.constant 0 : index
      %16 = vector.load %arg6[%c0_14, %c0_15] : memref<1x128xf32, #tpu.memory_space<vmem>>, vector<1x128xf32>
      %17 = vector.broadcast %16 : vector<1x128xf32> to vector<128x128xf32>
      %18 = arith.addf %15, %17 : vector<128x128xf32>
      %cst_16 = arith.constant 0.000000e+00 : f32
      %19 = vector.broadcast %cst_16 : f32 to vector<128x128xf32>
      %20 = arith.maximumf %18, %19 : vector<128x128xf32>
      %21 = arith.truncf %20 : vector<128x128xf32> to vector<128x128xbf16>
      %c0_17 = arith.constant 0 : index
      %c0_18 = arith.constant 0 : index
      %22 = vector.load %arg7[%c0_17, %c0_18] : memref<128x128xbf16, #tpu.memory_space<vmem>>, vector<128x128xbf16>
      %cst_19 = arith.constant dense<0.000000e+00> : vector<128x128xf32>
      %23 = tpu.matmul %21, %22, %cst_19 {dimension_numbers = #tpu.dot_dimension_numbers<[1], [0], [0], [1], [0, 0, 1, 1], [], []>} : vector<128x128xbf16>, vector<128x128xbf16>, vector<128x128xf32> -> vector<128x128xf32>
      %24 = arith.truncf %23 : vector<128x128xf32> to vector<128x128xbf16>
      %c0_20 = arith.constant 0 : index
      %c0_21 = arith.constant 0 : index
      %25 = vector.load %arg10[%c0_20, %c0_21] : memref<128x128xbf16, #tpu.memory_space<vmem>>, vector<128x128xbf16>
      tpu.vector_store %arg10[%c0_20, %c0_21], %24 {strides = array<i32>} : memref<128x128xbf16, #tpu.memory_space<vmem>>, vector<128x128xbf16>,
      %c0_22 = arith.constant 0 : index
      %c0_23 = arith.constant 0 : index
      %26 = vector.load %arg8[%c0_22, %c0_23] : memref<128x128xbf16, #tpu.memory_space<vmem>>, vector<128x128xbf16>
      %cst_24 = arith.constant dense<0.000000e+00> : vector<128x128xf32>
      %27 = tpu.matmul %21, %26, %cst_24 {dimension_numbers = #tpu.dot_dimension_numbers<[1], [0], [0], [1], [0, 0, 1, 1], [], []>} : vector<128x128xbf16>, vector<128x128xbf16>, vector<128x128xf32> -> vector<128x128xf32>
      %c0_25 = arith.constant 0 : index
      %c0_26 = arith.constant 0 : index
      %28 = vector.load %arg9[%c0_25, %c0_26] : memref<1x128xf32, #tpu.memory_space<vmem>>, vector<1x128xf32>
      %29 = vector.broadcast %28 : vector<1x128xf32> to vector<128x128xf32>
      %30 = arith.addf %27, %29 : vector<128x128xf32>
      %c0_27 = arith.constant 0 : index
      %c0_28 = arith.constant 0 : index
      %31 = vector.load %arg11[%c0_27, %c0_28] : memref<128x128xf32, #tpu.memory_space<vmem>>, vector<128x128xf32>
      tpu.vector_store %arg11[%c0_27, %c0_28], %30 {strides = array<i32>} : memref<128x128xf32, #tpu.memory_space<vmem>>, vector<128x128xf32>,
    } else {
    }
    return
  }
  func.func @transform_0(%arg0: i32, %arg1: i32) -> (i32, i32) {
    %c0_i32 = arith.constant 0 : i32
    return %arg0, %arg1 : i32, i32
  }
  func.func @transform_1(%arg0: i32, %arg1: i32) -> (i32, i32) {
    %c0_i32 = arith.constant 0 : i32
    %c0_i32_0 = arith.constant 0 : i32
    return %arg1, %c0_i32 : i32, i32
  }
  func.func @transform_2(%arg0: i32, %arg1: i32) -> (i32, i32) {
    %c0_i32 = arith.constant 0 : i32
    %c0_i32_0 = arith.constant 0 : i32
    return %arg0, %c0_i32 : i32, i32
  }
  func.func @transform_3(%arg0: i32, %arg1: i32) -> (i32, i32) {
    %c0_i32 = arith.constant 0 : i32
    %c0_i32_0 = arith.constant 0 : i32
    %c0_i32_1 = arith.constant 0 : i32
    return %c0_i32, %c0_i32_0 : i32, i32
  }
  func.func @transform_4(%arg0: i32, %arg1: i32) -> (i32, i32) {
    %c0_i32 = arith.constant 0 : i32
    %c0_i32_0 = arith.constant 0 : i32
    %c0_i32_1 = arith.constant 0 : i32
    return %c0_i32, %c0_i32_0 : i32, i32
  }
  func.func @transform_5(%arg0: i32, %arg1: i32) -> (i32, i32) {
    %c0_i32 = arith.constant 0 : i32
    %c0_i32_0 = arith.constant 0 : i32
    %c0_i32_1 = arith.constant 0 : i32
    return %c0_i32, %c0_i32_0 : i32, i32
  }
  func.func @transform_6(%arg0: i32, %arg1: i32) -> (i32, i32) {
    %c0_i32 = arith.constant 0 : i32
    %c0_i32_0 = arith.constant 0 : i32
    %c0_i32_1 = arith.constant 0 : i32
    return %c0_i32, %c0_i32_0 : i32, i32
  }
  func.func @transform_7(%arg0: i32, %arg1: i32) -> (i32, i32) {
    %c0_i32 = arith.constant 0 : i32
    %c0_i32_0 = arith.constant 0 : i32
    %c0_i32_1 = arith.constant 0 : i32
    return %c0_i32, %c0_i32_0 : i32, i32
  }
  func.func @transform_8(%arg0: i32, %arg1: i32) -> (i32, i32) {
    %c0_i32 = arith.constant 0 : i32
    %c0_i32_0 = arith.constant 0 : i32
    return %arg0, %c0_i32 : i32, i32
  }
  func.func @transform_9(%arg0: i32, %arg1: i32) -> (i32, i32) {
    %c0_i32 = arith.constant 0 : i32
    %c0_i32_0 = arith.constant 0 : i32
    return %arg0, %c0_i32 : i32, i32
  }
}

</mosaic_0001>

<bundles_post_ra>
// kernel: graphsage_forward.3
= control target key start
LH: loop header
LB: loop body
LE: loop exit
PB: predicated region body
PF: predicated region fallthrough
CT: control target
= control target key end

     0   :  { %s1048_s12 = smov 0   ;;  %s1050_s13 = smov 0   ;;  %s1219_s0 = inlined_call_operand.vmem [shape: bf16[256,256], index: 0, kind: input, shape index: {}]   ;;  %s1220_s1 = inlined_call_operand.vmem [shape: bf16[256,128], index: 1, kind: input, shape index: {}]   ;;  %s1221_s2 = inlined_call_operand.vmem [shape: f32[256,128], index: 2, kind: input, shape index: {}]   ;;  %s1222_s3 = inlined_call_operand.vmem [shape: f32[256,128], index: 3, kind: output, shape index: {}]  }
   0x1   :  { %s1052_s14 = smov 0   ;;  %s1054_s15 = smov 0  }
   0x2   :  { %s1056_s16 = smov 0   ;;  %s1058_s17 = smov 0  }
   0x3   :  { %s1060_s18 = smov 0  }
   0x4 LB: > { %s22_s19 = sadd.s32 1, %s1017_s16  ;;  %s25_s20 = sadd.s32 1, %s1021_s17  ;;  %s1025_s18 = sphi %s1060_s18, %s13_s18   ;;  %s1021_s17 = sphi %s1058_s17, %s1228_s17   ;;  %s1017_s16 = sphi %s1056_s16, %s1227_s16   ;;  %s1013_s15 = sphi %s1054_s15, %s1226_s15   ;;  %s1009_s14 = sphi %s1052_s14, %s1225_s14   ;;  %s1005_s13 = sphi %s1050_s13, %s1224_s13   ;;  %s1001_s12 = sphi %s1048_s12, %s1223_s12  }
   0x5   : > { %p23_p0 = scmp.ge.s32.totalorder %s22_s19, 2  ;;  %p41_p1 = scmp.ne.s32.totalorder %s1005_s13, %s1001_s12 }
   0x6   : > { %p42_p2 = scmp.eq.s32.totalorder %s1025_s18, 0  ;;  %s34_s24 = sadd.s32 1, %s1005_s13 }
   0x7   : > { %s1230_s19 = smov (%p23_p0, %s22_s19), 0  ;;  %s1232_s20 = smov (!%p23_p0, %s25_s20), %s1021_s17 }
   0x8   : > { %p43_p3 = por %p42_p2, %p41_p1  ;;  %p27_p4 = scmp.ge.s32.totalorder %s1232_s20, 2 }
   0x9   : > { %s30_s21 = ssub.s32 %s1017_s16, %s1230_s19  ;;  %p800_p6 = scmp.ge.s32.totalorder %s1025_s18, 4 }
   0xa   : > { %s1234_s20 = smov (%p27_p4, %s1232_s20), 0 }
   0xb   : > { %s29_s22 = ssub.s32 %s1021_s17, %s1234_s20  ;;  %145 = sbr.rel (%p800_p6) target bundleno = 34 (0x22), region = 16 }
   0xc   : > { %s31_s23 = sor.u32 %s30_s21, %s29_s22 }
   0xd   : > { %p32_p5 = scmp.eq.s32.totalorder %s31_s23, 0 }
   0xf   : > { %s1099_s25 = scalar_select %p32_p5, %s1005_s13, %s34_s24  }
  0x12   : > { %148 = sbr.rel (!%p43_p3) target bundleno = 34 (0x22), region = 20  ;;  %s150_s26 = sand.u32 (%p43_p3), 1, %s1005_s13  }
  0x13   : > { %s833_s27 = sshll.u32 (%p43_p3), %s1021_s17, 5  ;;  %s801_s28 = sshll.u32 (%p43_p3), %s150_s26, 6 }
  0x14   : > { %s155_s29 = sadd.s32 (%p43_p3), %s1017_s16, %s833_s27  ;;  %s152_s7 = scalar_lea.vmem (%p43_p3), [#allocation3], %s801_s28 }
  0x15   : > { %s804_s30 = sshll.u32 (%p43_p3), %s155_s29, 2 }
  0x16   : > { %s1108_s6 = scalar_lea.vmem (%p43_p3), %s1219_s0, %s804_s30 }
  0x17   : > { %v173_v0 = vld [vmem:[%s1108_s6] sm:$0xf] (%p43_p3)  ;;  %v175_v1 = vld [vmem:[%s1108_s6 + $0x8] sm:$0xf] (%p43_p3)  ;;  %v177_v2 = vld [vmem:[%s1108_s6 + $0x10] sm:$0xf] (%p43_p3) }
  0x18   : > { %174 = vst [vmem:[%s152_s7] sm:$0xf] (%p43_p3), %v173_v0  ;;  %176 = vst [vmem:[%s152_s7 + $0x4] sm:$0xf] (%p43_p3), %v175_v1  ;;  %v179_v3 = vld [vmem:[%s1108_s6 + $0x18] sm:$0xf] (%p43_p3) }
  0x19   : > { %178 = vst [vmem:[%s152_s7 + $0x8] sm:$0xf] %v177_v2  ;;  %v181_v4 = vld [vmem:[%s1108_s6 + $0x20] sm:$0xf]  ;;  %v183_v5 = vld [vmem:[%s1108_s6 + $0x28] sm:$0xf] }
  0x1a   : > { %180 = vst [vmem:[%s152_s7 + $0xc] sm:$0xf] %v179_v3  ;;  %182 = vst [vmem:[%s152_s7 + $0x10] sm:$0xf] %v181_v4  ;;  %v185_v6 = vld [vmem:[%s1108_s6 + $0x30] sm:$0xf] }
  0x1b   : > { %184 = vst [vmem:[%s152_s7 + $0x14] sm:$0xf] %v183_v5  ;;  %v187_v7 = vld [vmem:[%s1108_s6 + $0x38] sm:$0xf]  ;;  %v189_v8 = vld [vmem:[%s1108_s6 + $0x40] sm:$0xf] }
  0x1c   : > { %186 = vst [vmem:[%s152_s7 + $0x18] sm:$0xf] %v185_v6  ;;  %188 = vst [vmem:[%s152_s7 + $0x1c] sm:$0xf] %v187_v7  ;;  %v191_v9 = vld [vmem:[%s1108_s6 + $0x48] sm:$0xf] }
  0x1d   : > { %190 = vst [vmem:[%s152_s7 + $0x20] sm:$0xf] %v189_v8  ;;  %v193_v10 = vld [vmem:[%s1108_s6 + $0x50] sm:$0xf]  ;;  %v195_v11 = vld [vmem:[%s1108_s6 + $0x58] sm:$0xf] }
  0x1e   : > { %192 = vst [vmem:[%s152_s7 + $0x24] sm:$0xf] %v191_v9  ;;  %194 = vst [vmem:[%s152_s7 + $0x28] sm:$0xf] %v193_v10  ;;  %v197_v12 = vld [vmem:[%s1108_s6 + $0x60] sm:$0xf] }
  0x1f   : > { %196 = vst [vmem:[%s152_s7 + $0x2c] sm:$0xf] %v195_v11  ;;  %v199_v13 = vld [vmem:[%s1108_s6 + $0x68] sm:$0xf]  ;;  %v201_v14 = vld [vmem:[%s1108_s6 + $0x70] sm:$0xf] }
  0x20   : > { %198 = vst [vmem:[%s152_s7 + $0x30] sm:$0xf] %v197_v12  ;;  %200 = vst [vmem:[%s152_s7 + $0x34] sm:$0xf] %v199_v13  ;;  %v203_v15 = vld [vmem:[%s1108_s6 + $0x78] sm:$0xf] }
  0x21   : > { %202 = vst [vmem:[%s152_s7 + $0x38] sm:$0xf] %v201_v14  ;;  %204 = vst [vmem:[%s152_s7 + $0x3c] sm:$0xf] %v203_v15 }
  0x22 PF: > { %p805_p7 = scmp.ge.s32.totalorder %s1025_s18, 1  ;;  %p276_p8 = scmp.lt.s32.totalorder %s1025_s18, 5 }
  0x24   : > { %p277_p9 = pnand %p805_p7, %p276_p8 }
  0x25   : > { %s283_s8 = sand.u32 (!%p277_p9), 1, %s1001_s12   ;;  %s807_s9 = sshll.u32 (!%p277_p9), %s1009_s14, 4 }
  0x26   : > { %280 = sbr.rel (%p277_p9) target bundleno = 325 (0x145), region = 69  ;;  %s806_s10 = sshll.u32 (!%p277_p9), %s283_s8, 6 }
  0x27   : > { %p318_p10 = scmp.lt.s32.totalorder (!%p277_p9), %s807_s9, 31  ;;  %s809_s11 = sshll.u32 (!%p277_p9), %s1013_s15, 4 }
  0x28   : > { %p324_p11 = scmp.lt.s32.totalorder (!%p277_p9), %s809_s11, 31  ;;  %s1146_s15 = scalar_lea.vmem (!%p277_p9), [#allocation3], %s806_s10 }
  0x29   : > { %p813_p12 = scmp.ne.s32.totalorder (!%p277_p9), %s1009_s14, 0 }
  0x2d   : > { %s1236_s9 = smov (!%p318_p10, %s807_s9), 31  ;;  %s1238_s11 = smov (!%p324_p11, %s809_s11), 31 }
  0x2e   : > { %s808_s21 = sshll.u32 %s1236_s9, 2  ;;  %s810_s26 = sshll.u32 %s1238_s11, 3  ;;  %v1027_v16 = vmov (!%p813_p12), 0.0  }
  0x2f   : > { %s1134_s24 = scalar_lea.vmem %s1220_s1, %s808_s21  ;;  %s1139_s29 = scalar_lea.vmem %s1221_s2, %s810_s26  ;;  %340 = vst [vmem:[#allocation2] sm:$0xff] (!%p813_p12), %v1027_v16  ;;  %341 = vst [vmem:[#allocation2 + $0x8] sm:$0xff] (!%p813_p12), %v1027_v16 }
  0x30   : > { %s1144_s4 = scalar_lea.vmem %s1222_s3, %s810_s26  ;;  %339 = sbr.rel (%p813_p12) target bundleno = 55 (0x37), region = 77  ;;  %342 = vst [vmem:[#allocation2 + $0x10] sm:$0xff] (!%p813_p12), %v1027_v16  ;;  %343 = vst [vmem:[#allocation2 + $0x18] sm:$0xff] (!%p813_p12), %v1027_v16 }
  0x31   : > { %344 = vst [vmem:[#allocation2 + $0x20] sm:$0xff] (!%p813_p12), %v1027_v16  ;;  %345 = vst [vmem:[#allocation2 + $0x28] sm:$0xff] (!%p813_p12), %v1027_v16 }
  0x32   : > { %346 = vst [vmem:[#allocation2 + $0x30] sm:$0xff] (!%p813_p12), %v1027_v16  ;;  %347 = vst [vmem:[#allocation2 + $0x38] sm:$0xff] (!%p813_p12), %v1027_v16 }
  0x33   : > { %348 = vst [vmem:[#allocation2 + $0x40] sm:$0xff] (!%p813_p12), %v1027_v16  ;;  %349 = vst [vmem:[#allocation2 + $0x48] sm:$0xff] (!%p813_p12), %v1027_v16 }
  0x34   : > { %350 = vst [vmem:[#allocation2 + $0x50] sm:$0xff] (!%p813_p12), %v1027_v16  ;;  %351 = vst [vmem:[#allocation2 + $0x58] sm:$0xff] (!%p813_p12), %v1027_v16 }
  0x35   : > { %352 = vst [vmem:[#allocation2 + $0x60] sm:$0xff] (!%p813_p12), %v1027_v16  ;;  %353 = vst [vmem:[#allocation2 + $0x68] sm:$0xff] (!%p813_p12), %v1027_v16 }
  0x36   : > { %354 = vst [vmem:[#allocation2 + $0x70] sm:$0xff] (!%p813_p12), %v1027_v16  ;;  %355 = vst [vmem:[#allocation2 + $0x78] sm:$0xff] (!%p813_p12), %v1027_v16 }
  0x37 PF: > { %v955_v17 = vld [vmem:[%s1134_s24] sm:$0xff]   ;;  %v956_v18 = vld [vmem:[%s1134_s24 + $0x8] sm:$0xff]   ;;  %v957_v19 = vld [vmem:[%s1134_s24 + $0x10] sm:$0xff]   ;;  %p830_p13 = scmp.ne.s32.totalorder %s1009_s14, 1 }
  0x38   : > { %850 = vmatprep.subr.bf16.mxu0 %v955_v17  ;;  %882 = vmatprep.subr.bf16.mxu1 %v955_v17  ;;  %v958_v20 = vld [vmem:[%s1134_s24 + $0x18] sm:$0xff]   ;;  %v963_v21 = vld [vmem:[%s1146_s15] sm:$0xff]   ;;  %v960_v24 = vld [vmem:[%s1134_s24 + $0x28] sm:$0xff]  }
  0x39   : > { %851 = vmatpush3.bf16.msra.mxu0 %v955_v17  ;;  %890 = vmatpush3.bf16.msra.mxu1 %v955_v17  ;;  %v964_v22 = vld [vmem:[%s1146_s15 + $0x20] sm:$0xff]   ;;  %v961_v25 = vld [vmem:[%s1134_s24 + $0x30] sm:$0xff]   ;;  %v962_v26 = vld [vmem:[%s1134_s24 + $0x38] sm:$0xff]  }
  0x3a   : > { %852 = vmatprep.subr.bf16.mxu0 %v956_v18  ;;  %883 = vmatprep.subr.bf16.mxu1 %v956_v18  ;;  %v959_v23 = vld [vmem:[%s1134_s24 + $0x20] sm:$0xff]   ;;  %v965_v27 = vld [vmem:[%s1146_s15 + $0x8] sm:$0xff]   ;;  %v967_v29 = vld [vmem:[%s1146_s15 + $0x10] sm:$0xff]  }
  0x3b   : > { %866 = vmatprep.mubr.bf16.mxu0 %v963_v21  ;;  %874 = vmatprep.mubr.bf16.mxu1 %v964_v22  ;;  %v966_v28 = vld [vmem:[%s1146_s15 + $0x28] sm:$0xff]   ;;  %v968_v30 = vld [vmem:[%s1146_s15 + $0x30] sm:$0xff]   ;;  %v969_v31 = vld [vmem:[%s1146_s15 + $0x18] sm:$0xff]  }
  0x3c   : > { %v970_v32 = vld [vmem:[%s1146_s15 + $0x38] sm:$0xff]   ;;  %v358_v33 = vld [vmem:[#allocation2 + $0x10] sm:$0xff]  ;;  %v356_v35 = vld [vmem:[#allocation2] sm:$0xff] }
  0x3d   : > { %853 = vmatpush3.bf16.msra.mxu0 %v956_v18  ;;  %891 = vmatpush3.bf16.msra.mxu1 %v956_v18  ;;  %v366_v34 = vld [vmem:[#allocation2 + $0x50] sm:$0xff]  ;;  %v364_v36 = vld [vmem:[#allocation2 + $0x40] sm:$0xff]  ;;  %v359_v39 = vld [vmem:[#allocation2 + $0x18] sm:$0xff] }
  0x3e   : > { %854 = vmatprep.subr.bf16.mxu0 %v957_v19  ;;  %884 = vmatprep.subr.bf16.mxu1 %v957_v19  ;;  %v367_v40 = vld [vmem:[#allocation2 + $0x58] sm:$0xff]  ;;  %v357_v45 = vld [vmem:[#allocation2 + $0x8] sm:$0xff]  ;;  %v362_v57 = vld [vmem:[#allocation2 + $0x30] sm:$0xff] }
  0x3f   : > { %v365_v46 = vld [vmem:[#allocation2 + $0x48] sm:$0xff]  ;;  %v370_v58 = vld [vmem:[#allocation2 + $0x70] sm:$0xff]  ;;  %v360_v59 = vld [vmem:[#allocation2 + $0x20] sm:$0xff] }
  0x40   : > { %v368_v60 = vld [vmem:[#allocation2 + $0x60] sm:$0xff]  ;;  %v363_v63 = vld [vmem:[#allocation2 + $0x38] sm:$0xff]  ;;  %v361_v5 = vld [vmem:[#allocation2 + $0x28] sm:$0xff] }
  0x41   : > { %855 = vmatpush3.bf16.msra.mxu0 %v957_v19  ;;  %892 = vmatpush3.bf16.msra.mxu1 %v957_v19  ;;  %v371_v0 = vld [vmem:[#allocation2 + $0x78] sm:$0xff]  ;;  %v369_v6 = vld [vmem:[#allocation2 + $0x68] sm:$0xff]  ;;  %v649_v18 = vld [vmem:[%s1139_s29] sm:$0xff] (!%p830_p13) }
  0x42   : > { %856 = vmatprep.subr.bf16.mxu0 %v958_v20  ;;  %885 = vmatprep.subr.bf16.mxu1 %v958_v20  ;;  %v650_v21 = vld [vmem:[%s1139_s29 + $0x8] sm:$0xff] (!%p830_p13) }
  0x45   : > { %857 = vmatpush3.bf16.msra.mxu0 %v958_v20  ;;  %893 = vmatpush3.bf16.msra.mxu1 %v958_v20 }
  0x46   : > { %858 = vmatprep.subr.bf16.mxu0 %v959_v23  ;;  %886 = vmatprep.subr.bf16.mxu1 %v959_v23 }
  0x49   : > { %859 = vmatpush3.bf16.msra.mxu0 %v959_v23  ;;  %894 = vmatpush3.bf16.msra.mxu1 %v959_v23  ;;  %v651_v23 = vld [vmem:[%s1139_s29 + $0x10] sm:$0xff] (!%p830_p13) }
  0x4a   : > { %860 = vmatprep.subr.bf16.mxu0 %v960_v24  ;;  %887 = vmatprep.subr.bf16.mxu1 %v960_v24 }
  0x4d   : > { %861 = vmatpush3.bf16.msra.mxu0 %v960_v24  ;;  %895 = vmatpush3.bf16.msra.mxu1 %v960_v24 }
  0x4e   : > { %862 = vmatprep.subr.bf16.mxu0 %v961_v25  ;;  %888 = vmatprep.subr.bf16.mxu1 %v961_v25 }
  0x51   : > { %863 = vmatpush3.bf16.msra.mxu0 %v961_v25  ;;  %896 = vmatpush3.bf16.msra.mxu1 %v961_v25 }
  0x52   : > { %864 = vmatprep.subr.bf16.mxu0 %v962_v26  ;;  %889 = vmatprep.subr.bf16.mxu1 %v962_v26 }
  0x55   : > { %865 = vmatpush3.bf16.msra.mxu0 %v962_v26  ;;  %897 = vmatpush3.bf16.msra.mxu1 %v962_v26 }
  0x58   : > { %867 = vmatmul.mubr.bf16.vlgmr.msra.gmra.mrb[0].mxu0 %v965_v27  ;;  %875 = vmatmul.mubr.bf16.vlgmr.msra.gmra.mrb[0].mxu1 %v966_v28  ;;  %v652_v27 = vld [vmem:[%s1139_s29 + $0x18] sm:$0xff] (!%p830_p13) }
  0x59   : > { %870 = vmatprep.mubr.bf16.mxu0 %v967_v29  ;;  %878 = vmatprep.mubr.bf16.mxu1 %v968_v30  ;;  %v653_v30 = vld [vmem:[%s1139_s29 + $0x20] sm:$0xff] (!%p830_p13) }
  0x60   : > { %871 = vmatmul.mubr.bf16.gmra.mrb[4].mxu0 %v969_v31  ;;  %879 = vmatmul.mubr.bf16.gmra.mrb[4].mxu1 %v970_v32  ;;  %v654_v32 = vld [vmem:[%s1139_s29 + $0x28] sm:$0xff] (!%p830_p13) }
 0x12b   : > { %v868_v37 = vpop.f32.mrb[0].mxu0  ;;  %v876_v38 = vpop.f32.mrb[0].mxu1 }
 0x12c   : > { %v599_v41 = vadd.f32 %v868_v37, %v358_v33  ;;  %v607_v42 = vadd.f32 %v876_v38, %v366_v34  ;;  %v534_v43 = vpop.f32.mrb[1].mxu0  ;;  %v566_v44 = vpop.f32.mrb[1].mxu1 }
 0x12d   : > { %v597_v47 = vadd.f32 %v534_v43, %v356_v35  ;;  %v605_v48 = vadd.f32 %v566_v44, %v364_v36  ;;  %v869_v49 = vpop.f32.mrb[2].mxu0  ;;  %v877_v50 = vpop.f32.mrb[2].mxu1  ;;  %v655_v36 = vld [vmem:[%s1139_s29 + $0x30] sm:$0xff] (!%p830_p13) }
 0x12e   : > { %615 = vst [vmem:[#allocation2 + $0x10] sm:$0xff] %v599_v41  ;;  %623 = vst [vmem:[#allocation2 + $0x50] sm:$0xff] %v607_v42  ;;  %v600_v51 = vadd.f32 %v869_v49, %v359_v39  ;;  %v608_v52 = vadd.f32 %v877_v50, %v367_v40  ;;  %v537_v53 = vpop.f32.mrb[3].mxu0  ;;  %v569_v54 = vpop.f32.mrb[3].mxu1  ;;  %v656_v39 = vld [vmem:[%s1139_s29 + $0x38] sm:$0xff] (!%p830_p13)  ;;  %v657_v41 = vld [vmem:[%s1139_s29 + $0x40] sm:$0xff] (!%p830_p13) }
 0x12f   : > { %613 = vst [vmem:[#allocation2] sm:$0xff] %v597_v47  ;;  %621 = vst [vmem:[#allocation2 + $0x40] sm:$0xff] %v605_v48  ;;  %v598_v55 = vadd.f32 %v537_v53, %v357_v45  ;;  %v606_v56 = vadd.f32 %v569_v54, %v365_v46  ;;  %v658_v45 = vld [vmem:[%s1139_s29 + $0x48] sm:$0xff] (!%p830_p13)  ;;  %v659_v48 = vld [vmem:[%s1139_s29 + $0x50] sm:$0xff] (!%p830_p13) }
 0x130   : > { %616 = vst [vmem:[#allocation2 + $0x18] sm:$0xff] %v600_v51  ;;  %624 = vst [vmem:[#allocation2 + $0x58] sm:$0xff] %v608_v52  ;;  %v660_v50 = vld [vmem:[%s1139_s29 + $0x58] sm:$0xff] (!%p830_p13)  ;;  %v661_v54 = vld [vmem:[%s1139_s29 + $0x60] sm:$0xff] (!%p830_p13) }
 0x131   : > { %614 = vst [vmem:[#allocation2 + $0x8] sm:$0xff] %v598_v55  ;;  %622 = vst [vmem:[#allocation2 + $0x48] sm:$0xff] %v606_v56 }
 0x133   : > { %v872_v61 = vpop.f32.mrb[4].mxu0  ;;  %v880_v62 = vpop.f32.mrb[4].mxu1  ;;  %632 = sbr.rel (%p830_p13) target bundleno = 325 (0x145), region = 81 }
 0x134   : > { %v603_v1 = vadd.f32 %v872_v61, %v362_v57  ;;  %v611_v2 = vadd.f32 %v880_v62, %v370_v58  ;;  %v550_v3 = vpop.f32.mrb[5].mxu0  ;;  %v582_v4 = vpop.f32.mrb[5].mxu1  ;;  %v662_v57 = vld [vmem:[%s1139_s29 + $0x68] sm:$0xff] (!%p830_p13) }
 0x135   : > { %v601_v7 = vadd.f32 %v550_v3, %v360_v59  ;;  %v609_v8 = vadd.f32 %v582_v4, %v368_v60  ;;  %v873_v9 = vpop.f32.mrb[6].mxu0  ;;  %v881_v10 = vpop.f32.mrb[6].mxu1  ;;  %v635_v22 = vld [vmem:[#allocation2 + $0x10] sm:$0xff] (!%p830_p13) }
 0x136   : > { %619 = vst [vmem:[#allocation2 + $0x30] sm:$0xff] %v603_v1  ;;  %627 = vst [vmem:[#allocation2 + $0x70] sm:$0xff] %v611_v2  ;;  %v604_v11 = vadd.f32 %v873_v9, %v363_v63  ;;  %v612_v12 = vadd.f32 %v881_v10, %v371_v0  ;;  %v553_v13 = vpop.f32.mrb[7].mxu0  ;;  %v585_v14 = vpop.f32.mrb[7].mxu1  ;;  %v633_v17 = vld [vmem:[#allocation2] sm:$0xff] (!%p830_p13)  ;;  %v667_v25 = vadd.f32 (!%p830_p13), %v651_v23, %v635_v22  ;;  %v643_v46 = vld [vmem:[#allocation2 + $0x50] sm:$0xff] (!%p830_p13) }
 0x137   : > { %617 = vst [vmem:[#allocation2 + $0x20] sm:$0xff] %v601_v7  ;;  %625 = vst [vmem:[#allocation2 + $0x60] sm:$0xff] %v609_v8  ;;  %v602_v15 = vadd.f32 %v553_v13, %v361_v5  ;;  %v610_v16 = vadd.f32 %v585_v14, %v369_v6  ;;  %v665_v20 = vadd.f32 (!%p830_p13), %v649_v18, %v633_v17  ;;  %v636_v26 = vld [vmem:[#allocation2 + $0x18] sm:$0xff] (!%p830_p13)  ;;  %v641_v40 = vld [vmem:[#allocation2 + $0x40] sm:$0xff] (!%p830_p13) }
 0x138   : > { %620 = vst [vmem:[#allocation2 + $0x38] sm:$0xff] %v604_v11  ;;  %628 = vst [vmem:[#allocation2 + $0x78] sm:$0xff] %v612_v12  ;;  %v634_v19 = vld [vmem:[#allocation2 + $0x8] sm:$0xff] (!%p830_p13)  ;;  %v668_v29 = vadd.f32 (!%p830_p13), %v652_v27, %v636_v26  ;;  %v673_v43 = vadd.f32 (!%p830_p13), %v657_v41, %v641_v40  ;;  %v644_v49 = vld [vmem:[#allocation2 + $0x58] sm:$0xff] (!%p830_p13)  ;;  %v675_v51 = vadd.f32 (!%p830_p13), %v659_v48, %v643_v46 }
 0x139   : > { %618 = vst [vmem:[#allocation2 + $0x28] sm:$0xff] %v602_v15  ;;  %626 = vst [vmem:[#allocation2 + $0x68] sm:$0xff] %v610_v16  ;;  %v666_v24 = vadd.f32 (!%p830_p13), %v650_v21, %v634_v19  ;;  %v642_v44 = vld [vmem:[#allocation2 + $0x48] sm:$0xff] (!%p830_p13)  ;;  %v676_v52 = vadd.f32 (!%p830_p13), %v660_v50, %v644_v49  ;;  %v663_v59 = vld [vmem:[%s1139_s29 + $0x70] sm:$0xff] (!%p830_p13) }
 0x13a   : > { %681 = vst [vmem:[%s1144_s4] sm:$0xff] %v665_v20  ;;  %683 = vst [vmem:[%s1144_s4 + $0x10] sm:$0xff] %v667_v25  ;;  %v674_v47 = vadd.f32 %v658_v45, %v642_v44  ;;  %v664_v63 = vld [vmem:[%s1139_s29 + $0x78] sm:$0xff] }
 0x13b   : > { %682 = vst [vmem:[%s1144_s4 + $0x8] sm:$0xff] %v666_v24  ;;  %684 = vst [vmem:[%s1144_s4 + $0x18] sm:$0xff] %v668_v29 }
 0x13c   : > { %689 = vst [vmem:[%s1144_s4 + $0x40] sm:$0xff] %v673_v43  ;;  %690 = vst [vmem:[%s1144_s4 + $0x48] sm:$0xff] %v674_v47 }
 0x13d   : > { %v639_v35 = vld [vmem:[#allocation2 + $0x30] sm:$0xff]  ;;  %691 = vst [vmem:[%s1144_s4 + $0x50] sm:$0xff] %v675_v51  ;;  %692 = vst [vmem:[%s1144_s4 + $0x58] sm:$0xff] %v676_v52 }
 0x13e   : > { %v637_v28 = vld [vmem:[#allocation2 + $0x20] sm:$0xff]  ;;  %v671_v38 = vadd.f32 %v655_v36, %v639_v35  ;;  %v647_v58 = vld [vmem:[#allocation2 + $0x70] sm:$0xff] }
 0x13f   : > { %v669_v33 = vadd.f32 %v653_v30, %v637_v28  ;;  %v640_v37 = vld [vmem:[#allocation2 + $0x38] sm:$0xff]  ;;  %v645_v53 = vld [vmem:[#allocation2 + $0x60] sm:$0xff]  ;;  %v679_v61 = vadd.f32 %v663_v59, %v647_v58 }
 0x140   : > { %v638_v31 = vld [vmem:[#allocation2 + $0x28] sm:$0xff]  ;;  %v672_v42 = vadd.f32 %v656_v39, %v640_v37  ;;  %687 = vst [vmem:[%s1144_s4 + $0x30] sm:$0xff] %v671_v38  ;;  %v677_v56 = vadd.f32 %v661_v54, %v645_v53  ;;  %v648_v62 = vld [vmem:[#allocation2 + $0x78] sm:$0xff] }
 0x141   : > { %v670_v34 = vadd.f32 %v654_v32, %v638_v31  ;;  %685 = vst [vmem:[%s1144_s4 + $0x20] sm:$0xff] %v669_v33  ;;  %v646_v55 = vld [vmem:[#allocation2 + $0x68] sm:$0xff]  ;;  %v680_v0 = vadd.f32 %v664_v63, %v648_v62  ;;  %695 = vst [vmem:[%s1144_s4 + $0x70] sm:$0xff] %v679_v61 }
 0x142   : > { %688 = vst [vmem:[%s1144_s4 + $0x38] sm:$0xff] %v672_v42  ;;  %v678_v60 = vadd.f32 %v662_v57, %v646_v55  ;;  %693 = vst [vmem:[%s1144_s4 + $0x60] sm:$0xff] %v677_v56 }
 0x143   : > { %686 = vst [vmem:[%s1144_s4 + $0x28] sm:$0xff] %v670_v34  ;;  %696 = vst [vmem:[%s1144_s4 + $0x78] sm:$0xff] %v680_v0 }
 0x144   : > { %694 = vst [vmem:[%s1144_s4 + $0x68] sm:$0xff] %v678_v60 }
 0x145 PF: > { %s13_s18 = sadd.s32 1, %s1025_s18   ;;  %s1223_s12 = smov %s1005_s13 }
 0x146   : > { %p10_p0 = scmp.ge.s32.totalorder %s13_s18, 6   ;;  %s1224_s13 = smov %s1099_s25 }
 0x147   : > { %s1225_s14 = smov %s1017_s16  ;;  %s1226_s15 = smov %s1021_s17 }
 0x148   : > { %s1227_s16 = smov %s1230_s19  ;;  %s1228_s17 = smov %s1234_s20 }
 0x149   :  { %12 = sbr.rel (!%p10_p0) target bundleno = 4 (0x4), region = 122 }

// kernel: graphsage_forward.2
= control target key start
LH: loop header
LB: loop body
LE: loop exit
PB: predicated region body
PF: predicated region fallthrough
CT: control target
= control target key end

     0   :  { %s2671_s0 = inlined_call_operand.vmem [shape: bf16[256,256], index: 0, kind: input, shape index: {}]   ;;  %s2672_s1 = inlined_call_operand.vmem [shape: bf16[256,128], index: 1, kind: input, shape index: {}, may-alias: {1,2}]   ;;  %s2673_s2 = inlined_call_operand.vmem [shape: bf16[256,128], index: 2, kind: input, shape index: {}, may-alias: {1,2}]   ;;  %s2674_s3 = inlined_call_operand.vmem [shape: bf16[256,128], index: 3, kind: input, shape index: {}]   ;;  %s2675_s4 = inlined_call_operand.vmem [shape: f32[1,128], index: 4, kind: input, shape index: {}]   ;;  %s2676_s5 = inlined_call_operand.vmem [shape: bf16[128,128], index: 5, kind: input, shape index: {}]   ;;  %s2677_s6 = inlined_call_operand.vmem [shape: bf16[128,128], index: 6, kind: input, shape index: {}]   ;;  %s2678_s7 = inlined_call_operand.vmem [shape: f32[1,128], index: 7, kind: input, shape index: {}]   ;;  %s2679_s8 = inlined_call_operand.vmem [shape: bf16[256,128], index: 8, kind: output, shape index: {0}]   ;;  %s2680_s9 = inlined_call_operand.vmem [shape: f32[256,128], index: 9, kind: output, shape index: {1}]  }
   0x1   :  { %2684 = sst [smem:[#allocation7_spill]] %s2671_s0 }
   0x2   :  { %s2363_s30 = smov 0   ;;  %s2365_s10 = smov 0  }
   0x3   :  { %s2367_s11 = smov 0   ;;  %s2369_s12 = smov 0  }
   0x4   :  { %s2371_s13 = smov 0   ;;  %s2373_s14 = smov 0  }
   0x5   :  { %s2375_s15 = smov 0  }
   0x6 LB: > { %2685 = sst [smem:[#allocation4_spill]] %s2306_s14  ;;  %s29_s16 = sadd.s32 1, %s2302_s13  ;;  %s2310_s15 = sphi %s2375_s15, %s20_s15   ;;  %s2306_s14 = sphi %s2373_s14, %s2691_s14   ;;  %s2302_s13 = sphi %s2371_s13, %s2695_s13   ;;  %s2298_s12 = sphi %s2369_s12, %s2689_s12   ;;  %s2294_s11 = sphi %s2367_s11, %s2694_s11   ;;  %s2290_s10 = sphi %s2365_s10, %s2693_s10   ;;  %s2286_s30 = sphi %s2363_s30, %s2692_s30  }
   0x7   : > { %p30_p0 = scmp.ge.s32.totalorder %s29_s16, 2  ;;  %s32_s17 = sadd.s32 1, %s2306_s14 }
   0x8   : > { %p48_p1 = scmp.ne.s32.totalorder %s2290_s10, %s2286_s30  ;;  %p49_p2 = scmp.eq.s32.totalorder %s2310_s15, 0 }
   0x9   : > { %s2697_s16 = smov (%p30_p0, %s29_s16), 0  ;;  %s2699_s17 = smov (!%p30_p0, %s32_s17), %s2306_s14 }
   0xa   : > { %2686 = sst [smem:[#allocation5_spill]] %s2697_s16  ;;  %p50_p3 = por %p49_p2, %p48_p1 }
   0xb   : > { %p34_p4 = scmp.ge.s32.totalorder %s2699_s17, 2  ;;  %s37_s18 = ssub.s32 %s2302_s13, %s2697_s16 }
   0xc   : > { %s41_s21 = sadd.s32 1, %s2290_s10  ;;  %p1739_p6 = scmp.ge.s32.totalorder %s2310_s15, 4 }
   0xd   : > { %s2701_s17 = smov (%p34_p4, %s2699_s17), 0 }
   0xe   : > { %2687 = sst [smem:[#allocation6_spill]] %s2701_s17  ;;  %s36_s19 = ssub.s32 %s2306_s14, %s2701_s17 }
   0xf   : > { %s38_s20 = sor.u32 %s37_s18, %s36_s19  ;;  %298 = sbr.rel (%p1739_p6) target bundleno = 42 (0x2a), region = 36 }
  0x10   : > { %p39_p5 = scmp.eq.s32.totalorder %s38_s20, 0 }
  0x12   : > { %s2414_s22 = scalar_select %p39_p5, %s2290_s10, %s41_s21  }
  0x16   : > { %301 = sbr.rel (!%p50_p3) target bundleno = 42 (0x2a), region = 40  ;;  %s303_s23 = sand.u32 (%p50_p3), 1, %s2290_s10  }
  0x17   : > { %s1824_s24 = sshll.u32 (%p50_p3), %s2306_s14, 5  ;;  %s1740_s25 = sshll.u32 (%p50_p3), %s303_s23, 6 }
  0x18   : > { %s308_s26 = sadd.s32 (%p50_p3), %s2302_s13, %s1824_s24  ;;  %s2688_s0 = sld [smem:[#allocation7_spill]] (%p50_p3) }
  0x19   : > { %s1743_s27 = sshll.u32 (%p50_p3), %s308_s26, 2  ;;  %s305_s19 = scalar_lea.vmem (%p50_p3), [#allocation3], %s1740_s25 }
  0x1e   : > { %s2423_s18 = scalar_lea.vmem %s2688_s0, %s1743_s27 }
  0x1f   : > { %v326_v0 = vld [vmem:[%s2423_s18] sm:$0xf]  ;;  %v328_v1 = vld [vmem:[%s2423_s18 + $0x8] sm:$0xf]  ;;  %v330_v2 = vld [vmem:[%s2423_s18 + $0x10] sm:$0xf] }
  0x20   : > { %327 = vst [vmem:[%s305_s19] sm:$0xf] %v326_v0  ;;  %329 = vst [vmem:[%s305_s19 + $0x4] sm:$0xf] %v328_v1  ;;  %v332_v3 = vld [vmem:[%s2423_s18 + $0x18] sm:$0xf] }
  0x21   : > { %331 = vst [vmem:[%s305_s19 + $0x8] sm:$0xf] %v330_v2  ;;  %v334_v4 = vld [vmem:[%s2423_s18 + $0x20] sm:$0xf]  ;;  %v336_v5 = vld [vmem:[%s2423_s18 + $0x28] sm:$0xf] }
  0x22   : > { %333 = vst [vmem:[%s305_s19 + $0xc] sm:$0xf] %v332_v3  ;;  %335 = vst [vmem:[%s305_s19 + $0x10] sm:$0xf] %v334_v4  ;;  %v338_v6 = vld [vmem:[%s2423_s18 + $0x30] sm:$0xf] }
  0x23   : > { %337 = vst [vmem:[%s305_s19 + $0x14] sm:$0xf] %v336_v5  ;;  %v340_v7 = vld [vmem:[%s2423_s18 + $0x38] sm:$0xf]  ;;  %v342_v8 = vld [vmem:[%s2423_s18 + $0x40] sm:$0xf] }
  0x24   : > { %339 = vst [vmem:[%s305_s19 + $0x18] sm:$0xf] %v338_v6  ;;  %341 = vst [vmem:[%s305_s19 + $0x1c] sm:$0xf] %v340_v7  ;;  %v344_v9 = vld [vmem:[%s2423_s18 + $0x48] sm:$0xf] }
  0x25   : > { %343 = vst [vmem:[%s305_s19 + $0x20] sm:$0xf] %v342_v8  ;;  %v346_v10 = vld [vmem:[%s2423_s18 + $0x50] sm:$0xf]  ;;  %v348_v11 = vld [vmem:[%s2423_s18 + $0x58] sm:$0xf] }
  0x26   : > { %345 = vst [vmem:[%s305_s19 + $0x24] sm:$0xf] %v344_v9  ;;  %347 = vst [vmem:[%s305_s19 + $0x28] sm:$0xf] %v346_v10  ;;  %v350_v12 = vld [vmem:[%s2423_s18 + $0x60] sm:$0xf] }
  0x27   : > { %349 = vst [vmem:[%s305_s19 + $0x2c] sm:$0xf] %v348_v11  ;;  %v352_v13 = vld [vmem:[%s2423_s18 + $0x68] sm:$0xf]  ;;  %v354_v14 = vld [vmem:[%s2423_s18 + $0x70] sm:$0xf] }
  0x28   : > { %351 = vst [vmem:[%s305_s19 + $0x30] sm:$0xf] %v350_v12  ;;  %353 = vst [vmem:[%s305_s19 + $0x34] sm:$0xf] %v352_v13  ;;  %v356_v15 = vld [vmem:[%s2423_s18 + $0x78] sm:$0xf] }
  0x29   : > { %355 = vst [vmem:[%s305_s19 + $0x38] sm:$0xf] %v354_v14  ;;  %357 = vst [vmem:[%s305_s19 + $0x3c] sm:$0xf] %v356_v15 }
  0x2a PF: > { %p1744_p7 = scmp.ge.s32.totalorder %s2310_s15, 1  ;;  %p429_p8 = scmp.lt.s32.totalorder %s2310_s15, 5 }
  0x2c   : > { %p430_p9 = pnand %p1744_p7, %p429_p8 }
  0x2d   : > { %s436_s20 = sand.u32 (!%p430_p9), 1, %s2286_s30   ;;  %s1746_s21 = sshll.u32 (!%p430_p9), %s2294_s11, 4 }
  0x2e   : > { %433 = sbr.rel (%p430_p9) target bundleno = 861 (0x35d), region = 89  ;;  %s1745_s23 = sshll.u32 (!%p430_p9), %s436_s20, 6 }
  0x2f   : > { %p488_p10 = scmp.lt.s32.totalorder (!%p430_p9), %s1746_s21, 31  ;;  %s1748_s24 = sshll.u32 (!%p430_p9), %s2298_s12, 4 }
  0x30   : > { %p494_p11 = scmp.lt.s32.totalorder (!%p430_p9), %s1748_s24, 31  ;;  %p1754_p12 = scmp.ne.s32.totalorder (!%p430_p9), %s2294_s11, 0 }
  0x35   : > { %s2703_s21 = smov (!%p488_p10, %s1746_s21), 31  ;;  %s2705_s24 = smov (!%p494_p11, %s1748_s24), 31 }
  0x36   : > { %s1747_s25 = sshll.u32 %s2703_s21, 2  ;;  %s1749_s29 = sshll.u32 %s2705_s24, 2  ;;  %v2312_v19 = vmov (!%p1754_p12), 0.0  }
  0x37   : > { %s2449_s28 = scalar_lea.vmem %s2672_s1, %s1747_s25  ;;  %s1753_s18 = sshll.u32 %s2705_s24, 3  ;;  %516 = vst [vmem:[#allocation2] sm:$0xff] (!%p1754_p12), %v2312_v19  ;;  %518 = vst [vmem:[#allocation2 + $0x10] sm:$0xff] (!%p1754_p12), %v2312_v19 }
  0x38   : > { %s2454_s17 = scalar_lea.vmem %s2673_s2, %s1749_s29  ;;  %s2459_s12 = scalar_lea.vmem %s2679_s8, %s1749_s29  ;;  %520 = vst [vmem:[#allocation2 + $0x20] sm:$0xff] (!%p1754_p12), %v2312_v19  ;;  %522 = vst [vmem:[#allocation2 + $0x30] sm:$0xff] (!%p1754_p12), %v2312_v19 }
  0x39   : > { %s2464_s14 = scalar_lea.vmem %s2680_s9, %s1753_s18  ;;  %s2466_s25 = scalar_lea.vmem [#allocation3], %s1745_s23  ;;  %v1842_v16 = vld [vmem:[%s2454_s17] sm:$0xff] (!%p1754_p12)   ;;  %v1913_v17 = vld [vmem:[%s2454_s17 + $0x8] sm:$0xff] (!%p1754_p12)   ;;  %v1914_v18 = vld [vmem:[%s2454_s17 + $0x10] sm:$0xff] (!%p1754_p12)   ;;  %524 = vst [vmem:[#allocation2 + $0x40] sm:$0xff] (!%p1754_p12), %v2312_v19 }
  0x3a   : > { %515 = sbr.rel (%p1754_p12) target bundleno = 72 (0x48), region = 97  ;;  %526 = vst [vmem:[#allocation2 + $0x50] sm:$0xff] (!%p1754_p12), %v2312_v19  ;;  %528 = vst [vmem:[#allocation2 + $0x60] sm:$0xff] (!%p1754_p12), %v2312_v19  ;;  %v1843_v20 = vunpack.c.l.bf16 (!%p1754_p12), %v1842_v16  ;;  %v1844_v21 = vunpack.c.h.bf16 (!%p1754_p12), %v1842_v16  ;;  %v1847_v22 = vunpack.c.l.bf16 (!%p1754_p12), %v1913_v17  ;;  %v1848_v23 = vunpack.c.h.bf16 (!%p1754_p12), %v1913_v17  ;;  %v1915_v24 = vld [vmem:[%s2454_s17 + $0x18] sm:$0xff] (!%p1754_p12)   ;;  %v1916_v25 = vld [vmem:[%s2454_s17 + $0x20] sm:$0xff] (!%p1754_p12)  }
  0x3b   : > { %530 = vst [vmem:[#allocation2 + $0x70] sm:$0xff] (!%p1754_p12), %v2312_v19  ;;  %532 = vst [vmem:[#allocation2 + $0x80] sm:$0xff] (!%p1754_p12), %v2312_v19  ;;  %v1917_v26 = vld [vmem:[%s2454_s17 + $0x28] sm:$0xff] (!%p1754_p12)   ;;  %v1851_v27 = vunpack.c.l.bf16 (!%p1754_p12), %v1914_v18  ;;  %v1852_v28 = vunpack.c.h.bf16 (!%p1754_p12), %v1914_v18  ;;  %v1855_v29 = vunpack.c.l.bf16 (!%p1754_p12), %v1915_v24  ;;  %v1856_v30 = vunpack.c.h.bf16 (!%p1754_p12), %v1915_v24  ;;  %v1918_v31 = vld [vmem:[%s2454_s17 + $0x30] sm:$0xff] (!%p1754_p12)  }
  0x3c   : > { %534 = vst [vmem:[#allocation2 + $0x90] sm:$0xff] (!%p1754_p12), %v2312_v19  ;;  %536 = vst [vmem:[#allocation2 + $0xa0] sm:$0xff] (!%p1754_p12), %v2312_v19  ;;  %v1919_v32 = vld [vmem:[%s2454_s17 + $0x38] sm:$0xff] (!%p1754_p12)   ;;  %v1859_v33 = vunpack.c.l.bf16 (!%p1754_p12), %v1916_v25  ;;  %v1860_v34 = vunpack.c.h.bf16 (!%p1754_p12), %v1916_v25  ;;  %v1863_v35 = vunpack.c.l.bf16 (!%p1754_p12), %v1917_v26  ;;  %v1864_v36 = vunpack.c.h.bf16 (!%p1754_p12), %v1917_v26 }
  0x3d   : > { %538 = vst [vmem:[#allocation2 + $0xb0] sm:$0xff] (!%p1754_p12), %v2312_v19  ;;  %540 = vst [vmem:[#allocation2 + $0xc0] sm:$0xff] (!%p1754_p12), %v2312_v19  ;;  %v1867_v37 = vunpack.c.l.bf16 (!%p1754_p12), %v1918_v31  ;;  %v1868_v38 = vunpack.c.h.bf16 (!%p1754_p12), %v1918_v31  ;;  %v1871_v39 = vunpack.c.l.bf16 (!%p1754_p12), %v1919_v32  ;;  %v1872_v40 = vunpack.c.h.bf16 (!%p1754_p12), %v1919_v32 }
  0x3e   : > { %542 = vst [vmem:[#allocation2 + $0xd0] sm:$0xff] (!%p1754_p12), %v2312_v19  ;;  %544 = vst [vmem:[#allocation2 + $0xe0] sm:$0xff] (!%p1754_p12), %v2312_v19 }
  0x3f   : > { %546 = vst [vmem:[#allocation2 + $0xf0] sm:$0xff] (!%p1754_p12), %v2312_v19  ;;  %580 = vst [vmem:[#allocation2 + $0x8] sm:$0xff] (!%p1754_p12), %v1843_v20 }
  0x40   : > { %581 = vst [vmem:[#allocation2 + $0x18] sm:$0xff] (!%p1754_p12), %v1844_v21  ;;  %582 = vst [vmem:[#allocation2 + $0x28] sm:$0xff] (!%p1754_p12), %v1847_v22 }
  0x41   : > { %583 = vst [vmem:[#allocation2 + $0x38] sm:$0xff] %v1848_v23  ;;  %584 = vst [vmem:[#allocation2 + $0x48] sm:$0xff] %v1851_v27 }
  0x42   : > { %585 = vst [vmem:[#allocation2 + $0x58] sm:$0xff] %v1852_v28  ;;  %586 = vst [vmem:[#allocation2 + $0x68] sm:$0xff] %v1855_v29 }
  0x43   : > { %587 = vst [vmem:[#allocation2 + $0x78] sm:$0xff] %v1856_v30  ;;  %588 = vst [vmem:[#allocation2 + $0x88] sm:$0xff] %v1859_v33 }
  0x44   : > { %589 = vst [vmem:[#allocation2 + $0x98] sm:$0xff] %v1860_v34  ;;  %590 = vst [vmem:[#allocation2 + $0xa8] sm:$0xff] %v1863_v35 }
  0x45   : > { %591 = vst [vmem:[#allocation2 + $0xb8] sm:$0xff] %v1864_v36  ;;  %592 = vst [vmem:[#allocation2 + $0xc8] sm:$0xff] %v1867_v37 }
  0x46   : > { %593 = vst [vmem:[#allocation2 + $0xd8] sm:$0xff] %v1868_v38  ;;  %594 = vst [vmem:[#allocation2 + $0xe8] sm:$0xff] %v1871_v39 }
  0x47   : > { %595 = vst [vmem:[#allocation2 + $0xf8] sm:$0xff] %v1872_v40 }
  0x48 PF: > { %v2208_v41 = vld [vmem:[%s2449_s28] sm:$0xff]   ;;  %v2209_v42 = vld [vmem:[%s2449_s28 + $0x8] sm:$0xff]   ;;  %v2210_v43 = vld [vmem:[%s2449_s28 + $0x10] sm:$0xff]   ;;  %p1771_p13 = scmp.ne.s32.totalorder %s2294_s11, 1 }
  0x49   : > { %2039 = vmatprep.subr.bf16.mxu0 %v2208_v41  ;;  %2135 = vmatprep.subr.bf16.mxu1 %v2208_v41  ;;  %v2211_v44 = vld [vmem:[%s2449_s28 + $0x18] sm:$0xff]   ;;  %v2216_v45 = vld [vmem:[%s2466_s25] sm:$0xff]   ;;  %v2213_v48 = vld [vmem:[%s2449_s28 + $0x28] sm:$0xff]  }
  0x4a   : > { %2040 = vmatpush3.bf16.msra.mxu0 %v2208_v41  ;;  %2143 = vmatpush3.bf16.msra.mxu1 %v2208_v41  ;;  %v2217_v46 = vld [vmem:[%s2466_s25 + $0x20] sm:$0xff]   ;;  %v2214_v49 = vld [vmem:[%s2449_s28 + $0x30] sm:$0xff]   ;;  %v2215_v50 = vld [vmem:[%s2449_s28 + $0x38] sm:$0xff]  }
  0x4b   : > { %2041 = vmatprep.subr.bf16.mxu0 %v2209_v42  ;;  %2136 = vmatprep.subr.bf16.mxu1 %v2209_v42  ;;  %v2212_v47 = vld [vmem:[%s2449_s28 + $0x20] sm:$0xff]   ;;  %v2218_v51 = vld [vmem:[%s2466_s25 + $0x8] sm:$0xff]   ;;  %v2220_v53 = vld [vmem:[%s2466_s25 + $0x10] sm:$0xff]  }
  0x4c   : > { %2055 = vmatprep.mubr.bf16.mxu0 %v2216_v45  ;;  %2063 = vmatprep.mubr.bf16.mxu1 %v2217_v46  ;;  %v2219_v52 = vld [vmem:[%s2466_s25 + $0x28] sm:$0xff]   ;;  %v2221_v54 = vld [vmem:[%s2466_s25 + $0x30] sm:$0xff]   ;;  %v2222_v55 = vld [vmem:[%s2466_s25 + $0x18] sm:$0xff]  }
  0x4d   : > { %v2223_v56 = vld [vmem:[%s2466_s25 + $0x38] sm:$0xff]   ;;  %v598_v57 = vld [vmem:[#allocation2 + $0x20] sm:$0xff]  ;;  %v599_v63 = vld [vmem:[#allocation2 + $0x30] sm:$0xff] }
  0x4e   : > { %2042 = vmatpush3.bf16.msra.mxu0 %v2209_v42  ;;  %2144 = vmatpush3.bf16.msra.mxu1 %v2209_v42  ;;  %v606_v58 = vld [vmem:[#allocation2 + $0xa0] sm:$0xff]  ;;  %v607_v0 = vld [vmem:[#allocation2 + $0xb0] sm:$0xff] }
  0x4f   : > { %2043 = vmatprep.subr.bf16.mxu0 %v2210_v43  ;;  %2137 = vmatprep.subr.bf16.mxu1 %v2210_v43  ;;  %v596_v59 = vld [vmem:[#allocation2] sm:$0xff]  ;;  %v597_v5 = vld [vmem:[#allocation2 + $0x10] sm:$0xff] }
  0x50   : > { %v604_v60 = vld [vmem:[#allocation2 + $0x80] sm:$0xff]  ;;  %v605_v6 = vld [vmem:[#allocation2 + $0x90] sm:$0xff] }
  0x51   : > { %v602_v17 = vld [vmem:[#allocation2 + $0x60] sm:$0xff]  ;;  %v603_v23 = vld [vmem:[#allocation2 + $0x70] sm:$0xff] }
  0x52   : > { %2044 = vmatpush3.bf16.msra.mxu0 %v2210_v43  ;;  %2145 = vmatpush3.bf16.msra.mxu1 %v2210_v43  ;;  %v610_v18 = vld [vmem:[#allocation2 + $0xe0] sm:$0xff]  ;;  %v611_v24 = vld [vmem:[#allocation2 + $0xf0] sm:$0xff]  ;;  %v2226_v43 = vld [vmem:[%s2674_s3 + $0x48] sm:$0xff] (!%p1771_p13)  }
  0x53   : > { %2045 = vmatprep.subr.bf16.mxu0 %v2211_v44  ;;  %2138 = vmatprep.subr.bf16.mxu1 %v2211_v44  ;;  %v600_v19 = vld [vmem:[#allocation2 + $0x40] sm:$0xff]  ;;  %v601_v29 = vld [vmem:[#allocation2 + $0x50] sm:$0xff] }
  0x54   : > { %v608_v20 = vld [vmem:[#allocation2 + $0xc0] sm:$0xff]  ;;  %v609_v30 = vld [vmem:[#allocation2 + $0xd0] sm:$0xff] }
  0x55   : > { %v2224_v41 = vld [vmem:[%s2674_s3 + $0x40] sm:$0xff] (!%p1771_p13)   ;;  %v2228_v45 = vld [vmem:[%s2674_s3 + $0x50] sm:$0xff] (!%p1771_p13)  }
  0x56   : > { %2046 = vmatpush3.bf16.msra.mxu0 %v2211_v44  ;;  %2146 = vmatpush3.bf16.msra.mxu1 %v2211_v44  ;;  %v2225_v42 = vld [vmem:[%s2674_s3] sm:$0xff] (!%p1771_p13)   ;;  %v2227_v44 = vld [vmem:[%s2674_s3 + $0x8] sm:$0xff] (!%p1771_p13)   ;;  %v2229_v46 = vld [vmem:[%s2674_s3 + $0x10] sm:$0xff] (!%p1771_p13)  }
  0x57   : > { %2047 = vmatprep.subr.bf16.mxu0 %v2212_v47  ;;  %2139 = vmatprep.subr.bf16.mxu1 %v2212_v47 }
  0x5a   : > { %2048 = vmatpush3.bf16.msra.mxu0 %v2212_v47  ;;  %2147 = vmatpush3.bf16.msra.mxu1 %v2212_v47  ;;  %v2230_v47 = vld [vmem:[%s2674_s3 + $0x58] sm:$0xff] (!%p1771_p13)  }
  0x5b   : > { %2049 = vmatprep.subr.bf16.mxu0 %v2213_v48  ;;  %2140 = vmatprep.subr.bf16.mxu1 %v2213_v48 }
  0x5e   : > { %2050 = vmatpush3.bf16.msra.mxu0 %v2213_v48  ;;  %2148 = vmatpush3.bf16.msra.mxu1 %v2213_v48  ;;  %v2231_v48 = vld [vmem:[%s2674_s3 + $0x18] sm:$0xff] (!%p1771_p13)  }
  0x5f   : > { %2051 = vmatprep.subr.bf16.mxu0 %v2214_v49  ;;  %2141 = vmatprep.subr.bf16.mxu1 %v2214_v49 }
  0x62   : > { %2052 = vmatpush3.bf16.msra.mxu0 %v2214_v49  ;;  %2149 = vmatpush3.bf16.msra.mxu1 %v2214_v49  ;;  %v2232_v49 = vld [vmem:[%s2674_s3 + $0x60] sm:$0xff] (!%p1771_p13)  }
  0x63   : > { %2053 = vmatprep.subr.bf16.mxu0 %v2215_v50  ;;  %2142 = vmatprep.subr.bf16.mxu1 %v2215_v50 }
  0x66   : > { %2054 = vmatpush3.bf16.msra.mxu0 %v2215_v50  ;;  %2150 = vmatpush3.bf16.msra.mxu1 %v2215_v50  ;;  %v2233_v50 = vld [vmem:[%s2674_s3 + $0x20] sm:$0xff] (!%p1771_p13)  }
  0x67   : > { %1943 = vmatprep.subr.bf16.mxu0 (!%p1771_p13), %v2224_v41 }
  0x69   : > { %2056 = vmatmul.mubr.bf16.vlgmr.msra.gmra.mrb[0].mxu0 %v2218_v51  ;;  %2064 = vmatmul.mubr.bf16.vlgmr.msra.gmra.mrb[0].mxu1 %v2219_v52  ;;  %v2234_v51 = vld [vmem:[%s2674_s3 + $0x68] sm:$0xff] (!%p1771_p13)  }
  0x6a   : > { %2059 = vmatprep.mubr.bf16.mxu0 %v2220_v53  ;;  %2067 = vmatprep.mubr.bf16.mxu1 %v2221_v54  ;;  %v874_v52 = vld [vmem:[#allocation2 + $0x8] sm:$0xff] (!%p1771_p13)  ;;  %v876_v53 = vld [vmem:[#allocation2 + $0x18] sm:$0xff] (!%p1771_p13) }
  0x6b   : > { %1944 = vmatpush3.bf16.msra.mxu0 (!%p1771_p13), %v2225_v42  ;;  %v906_v54 = vpack.c.bf16 (!%p1771_p13), %v876_v53, %v874_v52 }
  0x6c   : > { %1945 = vmatprep.subr.bf16.mxu0 (!%p1771_p13), %v2226_v43 }
  0x6f   : > { %1946 = vmatpush3.bf16.msra.mxu0 (!%p1771_p13), %v2227_v44  ;;  %v2243_v44 = vld [vmem:[%s2676_s5 + $0x18] sm:$0xff] (!%p1771_p13)  }
  0x70   : > { %1947 = vmatprep.subr.bf16.mxu0 (!%p1771_p13), %v2228_v45  ;;  %v2244_v45 = vld [vmem:[%s2676_s5 + $0x20] sm:$0xff] (!%p1771_p13)  }
  0x71   : > { %2060 = vmatmul.mubr.bf16.gmra.mrb[4].mxu0 %v2222_v55  ;;  %2068 = vmatmul.mubr.bf16.gmra.mrb[4].mxu1 %v2223_v56  ;;  %v2235_v55 = vld [vmem:[%s2674_s3 + $0x28] sm:$0xff] (!%p1771_p13)   ;;  %v2236_v56 = vld [vmem:[%s2674_s3 + $0x70] sm:$0xff] (!%p1771_p13)  }
  0x72   : > { %1088 = vmatprep.mubr.bf16.mxu0 (!%p1771_p13), %v906_v54 }
  0x73   : > { %1948 = vmatpush3.bf16.msra.mxu0 (!%p1771_p13), %v2229_v46  ;;  %v2245_v46 = vld [vmem:[%s2676_s5 + $0x28] sm:$0xff] (!%p1771_p13)  }
  0x74   : > { %1949 = vmatprep.subr.bf16.mxu0 (!%p1771_p13), %v2230_v47  ;;  %v2246_v47 = vld [vmem:[%s2676_s5 + $0x30] sm:$0xff] (!%p1771_p13)  }
  0x77   : > { %1950 = vmatpush3.bf16.msra.mxu0 (!%p1771_p13), %v2231_v48  ;;  %v2247_v48 = vld [vmem:[%s2676_s5 + $0x38] sm:$0xff] (!%p1771_p13)  }
  0x78   : > { %1951 = vmatprep.subr.bf16.mxu0 (!%p1771_p13), %v2232_v49  ;;  %v2248_v49 = vld [vmem:[%s2677_s6] sm:$0xff] (!%p1771_p13)  }
  0x7b   : > { %1952 = vmatpush3.bf16.msra.mxu0 (!%p1771_p13), %v2233_v50 }
  0x7c   : > { %1953 = vmatprep.subr.bf16.mxu0 (!%p1771_p13), %v2234_v51  ;;  %v2572_v51 = vld [vmem:[%s2675_s4] ss:$0 sm:$0xff] (!%p1771_p13) }
  0x7f   : > { %1954 = vmatpush3.bf16.msra.mxu0 (!%p1771_p13), %v2235_v55 }
  0x80   : > { %1955 = vmatprep.subr.bf16.mxu0 (!%p1771_p13), %v2236_v56 }
 0x13c   : > { %v2057_v61 = vpop.f32.mrb[0].mxu0  ;;  %v2065_v62 = vpop.f32.mrb[0].mxu1 }
 0x13d   : > { %v839_v1 = vadd.f32 %v2057_v61, %v598_v57  ;;  %v847_v2 = vadd.f32 %v2065_v62, %v606_v58  ;;  %v774_v3 = vpop.f32.mrb[1].mxu0  ;;  %v806_v4 = vpop.f32.mrb[1].mxu1  ;;  %v2237_v57 = vld [vmem:[%s2674_s3 + $0x30] sm:$0xff] (!%p1771_p13)   ;;  %v2238_v58 = vld [vmem:[%s2674_s3 + $0x78] sm:$0xff] (!%p1771_p13)   ;;  %v878_v62 = vld [vmem:[#allocation2 + $0x28] sm:$0xff] (!%p1771_p13) }
 0x13e   : > { %v837_v7 = vadd.f32 %v774_v3, %v596_v59  ;;  %v845_v8 = vadd.f32 %v806_v4, %v604_v60  ;;  %v2058_v9 = vpop.f32.mrb[2].mxu0  ;;  %v2066_v10 = vpop.f32.mrb[2].mxu1  ;;  %v2239_v59 = vld [vmem:[%s2674_s3 + $0x38] sm:$0xff] (!%p1771_p13)   ;;  %1956 = vmatpush3.bf16.msra.mxu0 (!%p1771_p13), %v2237_v57 }
 0x13f   : > { %855 = vst [vmem:[#allocation2 + $0x20] sm:$0xff] %v839_v1  ;;  %863 = vst [vmem:[#allocation2 + $0xa0] sm:$0xff] %v847_v2  ;;  %v840_v11 = vadd.f32 %v2058_v9, %v599_v63  ;;  %v848_v12 = vadd.f32 %v2066_v10, %v607_v0  ;;  %v777_v13 = vpop.f32.mrb[3].mxu0  ;;  %v809_v14 = vpop.f32.mrb[3].mxu1  ;;  %v880_v63 = vld [vmem:[#allocation2 + $0x38] sm:$0xff] (!%p1771_p13)  ;;  %v2240_v0 = vld [vmem:[%s2676_s5] sm:$0xff] (!%p1771_p13)   ;;  %1957 = vmatprep.subr.bf16.mxu0 (!%p1771_p13), %v2238_v58 }
 0x140   : > { %853 = vst [vmem:[#allocation2] sm:$0xff] %v837_v7  ;;  %861 = vst [vmem:[#allocation2 + $0x80] sm:$0xff] %v845_v8  ;;  %v838_v15 = vadd.f32 %v777_v13, %v597_v5  ;;  %v846_v16 = vadd.f32 %v809_v14, %v605_v6  ;;  %v2241_v1 = vld [vmem:[%s2676_s5 + $0x8] sm:$0xff] (!%p1771_p13)   ;;  %2071 = vmatprep.subr.bf16.mxu1 (!%p1771_p13), %v2240_v0  ;;  %v2242_v2 = vld [vmem:[%s2676_s5 + $0x10] sm:$0xff] (!%p1771_p13)   ;;  %v908_v4 = vpack.c.bf16 (!%p1771_p13), %v880_v63, %v878_v62 }
 0x141   : > { %856 = vst [vmem:[#allocation2 + $0x30] sm:$0xff] %v840_v11  ;;  %864 = vst [vmem:[#allocation2 + $0xb0] sm:$0xff] %v848_v12  ;;  %2072 = vmatpush3.bf16.msra.mxu1 (!%p1771_p13), %v2240_v0  ;;  %v882_v7 = vld [vmem:[#allocation2 + $0x48] sm:$0xff] (!%p1771_p13)  ;;  %v884_v8 = vld [vmem:[#allocation2 + $0x58] sm:$0xff] (!%p1771_p13) }
 0x142   : > { %854 = vst [vmem:[#allocation2 + $0x10] sm:$0xff] %v838_v15  ;;  %862 = vst [vmem:[#allocation2 + $0x90] sm:$0xff] %v846_v16  ;;  %1958 = vmatpush3.bf16.msra.mxu0 (!%p1771_p13), %v2239_v59  ;;  %2073 = vmatprep.subr.bf16.mxu1 (!%p1771_p13), %v2241_v1  ;;  %v910_v10 = vpack.c.bf16 (!%p1771_p13), %v884_v8, %v882_v7  ;;  %v886_v13 = vld [vmem:[#allocation2 + $0x68] sm:$0xff] (!%p1771_p13)  ;;  %v888_v14 = vld [vmem:[#allocation2 + $0x78] sm:$0xff] (!%p1771_p13) }
 0x143   : > { %v912_v16 = vpack.c.bf16 (!%p1771_p13), %v888_v14, %v886_v13  ;;  %v2249_v13 = vld [vmem:[%s2677_s6 + $0x8] sm:$0xff] (!%p1771_p13)  }
 0x144   : > { %v2061_v21 = vpop.f32.mrb[4].mxu0  ;;  %v2069_v22 = vpop.f32.mrb[4].mxu1  ;;  %872 = sbr.rel (%p1771_p13) target bundleno = 861 (0x35d), region = 101 }
 0x145   : > { %v843_v25 = vadd.f32 %v2061_v21, %v602_v17  ;;  %v851_v26 = vadd.f32 %v2069_v22, %v610_v18  ;;  %v790_v27 = vpop.f32.mrb[5].mxu0  ;;  %v822_v28 = vpop.f32.mrb[5].mxu1  ;;  %2074 = vmatpush3.bf16.msra.mxu1 (!%p1771_p13), %v2241_v1 }
 0x146   : > { %v841_v31 = vadd.f32 %v790_v27, %v600_v19  ;;  %v849_v32 = vadd.f32 %v822_v28, %v608_v20  ;;  %v2062_v33 = vpop.f32.mrb[6].mxu0  ;;  %v2070_v34 = vpop.f32.mrb[6].mxu1  ;;  %v877_v5 = vld [vmem:[#allocation2 + $0x20] sm:$0xff] (!%p1771_p13)  ;;  %2075 = vmatprep.subr.bf16.mxu1 (!%p1771_p13), %v2242_v2  ;;  %v890_v19 = vld [vmem:[#allocation2 + $0x88] sm:$0xff] (!%p1771_p13)  ;;  %v892_v20 = vld [vmem:[#allocation2 + $0x98] sm:$0xff] (!%p1771_p13) }
 0x147   : > { %859 = vst [vmem:[#allocation2 + $0x60] sm:$0xff] %v843_v25  ;;  %867 = vst [vmem:[#allocation2 + $0xe0] sm:$0xff] %v851_v26  ;;  %v844_v35 = vadd.f32 %v2062_v33, %v603_v23  ;;  %v852_v36 = vadd.f32 %v2070_v34, %v611_v24  ;;  %v793_v37 = vpop.f32.mrb[7].mxu0  ;;  %v825_v38 = vpop.f32.mrb[7].mxu1  ;;  %v873_v60 = vld [vmem:[#allocation2] sm:$0xff] (!%p1771_p13)  ;;  %v914_v22 = vpack.c.bf16 (!%p1771_p13), %v892_v20, %v890_v19  ;;  %v894_v25 = vld [vmem:[#allocation2 + $0xa8] sm:$0xff] (!%p1771_p13) }
 0x148   : > { %857 = vst [vmem:[#allocation2 + $0x40] sm:$0xff] %v841_v31  ;;  %865 = vst [vmem:[#allocation2 + $0xc0] sm:$0xff] %v849_v32  ;;  %v842_v39 = vadd.f32 %v793_v37, %v601_v29  ;;  %v850_v40 = vadd.f32 %v825_v38, %v609_v30  ;;  %v879_v6 = vld [vmem:[#allocation2 + $0x30] sm:$0xff] (!%p1771_p13)  ;;  %v889_v23 = vld [vmem:[#allocation2 + $0x80] sm:$0xff] (!%p1771_p13) }
 0x149   : > { %860 = vst [vmem:[#allocation2 + $0x70] sm:$0xff] %v844_v35  ;;  %868 = vst [vmem:[#allocation2 + $0xf0] sm:$0xff] %v852_v36  ;;  %v875_v61 = vld [vmem:[#allocation2 + $0x10] sm:$0xff] (!%p1771_p13)  ;;  %v907_v9 = vpack.c.bf16 (!%p1771_p13), %v879_v6, %v877_v5  ;;  %2076 = vmatpush3.bf16.msra.mxu1 (!%p1771_p13), %v2242_v2  ;;  %v896_v26 = vld [vmem:[#allocation2 + $0xb8] sm:$0xff] (!%p1771_p13) }
 0x14a   : > { %858 = vst [vmem:[#allocation2 + $0x50] sm:$0xff] %v842_v39  ;;  %866 = vst [vmem:[#allocation2 + $0xd0] sm:$0xff] %v850_v40  ;;  %v905_v3 = vpack.c.bf16 (!%p1771_p13), %v875_v61, %v873_v60  ;;  %v891_v24 = vld [vmem:[#allocation2 + $0x90] sm:$0xff] (!%p1771_p13)  ;;  %v916_v28 = vpack.c.bf16 (!%p1771_p13), %v896_v26, %v894_v25  ;;  %v893_v29 = vld [vmem:[#allocation2 + $0xa0] sm:$0xff] (!%p1771_p13)  ;;  %2077 = vmatprep.subr.bf16.mxu1 (!%p1771_p13), %v2243_v44 }
 0x14b   : > { %v913_v27 = vpack.c.bf16 %v891_v24, %v889_v23  ;;  %v895_v30 = vld [vmem:[#allocation2 + $0xb0] sm:$0xff]  ;;  %v898_v31 = vld [vmem:[#allocation2 + $0xc8] sm:$0xff]  ;;  %v900_v32 = vld [vmem:[#allocation2 + $0xd8] sm:$0xff] }
 0x14c   : > { %1089 = vmatmul.mubr.bf16.vlgmr.msra.gmra.mrb[0].mxu0 %v905_v3  ;;  %v915_v33 = vpack.c.bf16 %v895_v30, %v893_v29  ;;  %v918_v34 = vpack.c.bf16 %v900_v32, %v898_v31  ;;  %v902_v37 = vld [vmem:[#allocation2 + $0xe8] sm:$0xff]  ;;  %v904_v38 = vld [vmem:[#allocation2 + $0xf8] sm:$0xff]  ;;  %v2252_v31 = vld [vmem:[%s2677_s6 + $0x20] sm:$0xff]  }
 0x14d   : > { %1096 = vmatprep.mubr.bf16.mxu0 %v908_v4  ;;  %v920_v40 = vpack.c.bf16 %v904_v38, %v902_v37  ;;  %2078 = vmatpush3.bf16.msra.mxu1 %v2243_v44  ;;  %v2251_v26 = vld [vmem:[%s2677_s6 + $0x18] sm:$0xff]   ;;  %v2254_v44 = vld [vmem:[%s2677_s6 + $0x30] sm:$0xff]  }
 0x14e   : > { %v885_v17 = vld [vmem:[#allocation2 + $0x60] sm:$0xff]  ;;  %2079 = vmatprep.subr.bf16.mxu1 %v2244_v45 }
 0x14f   : > { %v881_v11 = vld [vmem:[#allocation2 + $0x40] sm:$0xff] }
 0x150   : > { %v887_v18 = vld [vmem:[#allocation2 + $0x70] sm:$0xff]  ;;  %v897_v35 = vld [vmem:[#allocation2 + $0xc0] sm:$0xff] }
 0x151   : > { %v883_v12 = vld [vmem:[#allocation2 + $0x50] sm:$0xff]  ;;  %v911_v21 = vpack.c.bf16 %v887_v18, %v885_v17  ;;  %v901_v41 = vld [vmem:[#allocation2 + $0xe0] sm:$0xff]  ;;  %2080 = vmatpush3.bf16.msra.mxu1 %v2244_v45 }
 0x152   : > { %v909_v15 = vpack.c.bf16 %v883_v12, %v881_v11  ;;  %v899_v36 = vld [vmem:[#allocation2 + $0xd0] sm:$0xff]  ;;  %2081 = vmatprep.subr.bf16.mxu1 %v2245_v46 }
 0x153   : > { %v917_v39 = vpack.c.bf16 %v899_v36, %v897_v35  ;;  %v903_v42 = vld [vmem:[#allocation2 + $0xf0] sm:$0xff] }
 0x154   : > { %1097 = vmatmul.mubr.bf16.gmra.mrb[4].mxu0 %v907_v9  ;;  %v919_v43 = vpack.c.bf16 %v903_v42, %v901_v41  ;;  %v2250_v18 = vld [vmem:[%s2677_s6 + $0x10] sm:$0xff]  }
 0x155   : > { %1104 = vmatprep.mubr.bf16.mxu0 %v910_v10  ;;  %2082 = vmatpush3.bf16.msra.mxu1 %v2245_v46 }
 0x156   : > { %2083 = vmatprep.subr.bf16.mxu1 %v2246_v47 }
 0x159   : > { %2084 = vmatpush3.bf16.msra.mxu1 %v2246_v47 }
 0x15a   : > { %2085 = vmatprep.subr.bf16.mxu1 %v2247_v48 }
 0x15c   : > { %1105 = vmatmul.mubr.bf16.gmra.mrb[8].mxu0 %v909_v15 }
 0x15d   : > { %1112 = vmatprep.mubr.bf16.mxu0 %v912_v16  ;;  %2086 = vmatpush3.bf16.msra.mxu1 %v2247_v48 }
 0x15e   : > { %2103 = vmatprep.subr.bf16.mxu1 %v2248_v49 }
 0x164   : > { %1113 = vmatmul.mubr.bf16.gmra.mrb[12].mxu0 %v911_v21 }
 0x165   : > { %1120 = vmatprep.mubr.bf16.mxu0 %v914_v22 }
 0x16c   : > { %1121 = vmatmul.mubr.bf16.gmra.mrb[16].mxu0 %v913_v27 }
 0x16d   : > { %1128 = vmatprep.mubr.bf16.mxu0 %v916_v28 }
 0x174   : > { %1129 = vmatmul.mubr.bf16.gmra.mrb[20].mxu0 %v915_v33 }
 0x175   : > { %1136 = vmatprep.mubr.bf16.mxu0 %v918_v34 }
 0x17c   : > { %1137 = vmatmul.mubr.bf16.gmra.mrb[24].mxu0 %v917_v39  ;;  %v2253_v39 = vld [vmem:[%s2677_s6 + $0x28] sm:$0xff]  }
 0x17d   : > { %1144 = vmatprep.mubr.bf16.mxu0 %v920_v40 }
 0x184   : > { %1145 = vmatmul.mubr.bf16.gmra.mrb[28].mxu0 %v919_v43 }
 0x21f   : > { %v1959_v50 = vpop.f32.mrb[0].mxu0 }
 0x220   : > { %v1960_v52 = vpop.f32.mrb[1].mxu0 }
 0x221   : > { %v1961_v53 = vadd.f32 %v1960_v52, %v1959_v50  ;;  %v1962_v54 = vpop.f32.mrb[2].mxu0 }
 0x222   : > { %v1963_v55 = vpop.f32.mrb[3].mxu0 }
 0x223   : > { %v1091_v56 = vadd.f32 %v1961_v53, %v2572_v51  ;;  %v1964_v57 = vadd.f32 %v1963_v55, %v1962_v54  ;;  %v2255_v53 = vld [vmem:[%s2677_s6 + $0x38] sm:$0xff]  }
 0x225   : > { %v1094_v58 = vadd.f32 %v1964_v57, %v2572_v51  ;;  %v1153_v59 = vmax.f32 %v1091_v56, 0.0 }
 0x227   : > { %v1154_v60 = vmax.f32 %v1094_v58, 0.0  ;;  %v1965_v61 = vpop.f32.mrb[4].mxu0 }
 0x228   : > { %v1966_v62 = vpop.f32.mrb[5].mxu0 }
 0x229   : > { %v1967_v63 = vadd.f32 %v1966_v62, %v1965_v61  ;;  %v1968_v0 = vpop.f32.mrb[6].mxu0  ;;  %v2576_v1 = vpack.c.bf16 %v1154_v60, %v1153_v59 }
 0x22a   : > { %v1969_v2 = vpop.f32.mrb[7].mxu0 }
 0x22b   : > { %v1099_v3 = vadd.f32 %v1967_v63, %v2572_v51  ;;  %v1970_v4 = vadd.f32 %v1969_v2, %v1968_v0  ;;  %2087 = vmatprep.mubr.bf16.mxu1 %v2576_v1 }
 0x22d   : > { %v1102_v5 = vadd.f32 %v1970_v4, %v2572_v51  ;;  %v1155_v6 = vmax.f32 %v1099_v3, 0.0 }
 0x22f   : > { %v1156_v7 = vmax.f32 %v1102_v5, 0.0  ;;  %v1971_v8 = vpop.f32.mrb[8].mxu0 }
 0x230   : > { %v1972_v9 = vpop.f32.mrb[9].mxu0 }
 0x231   : > { %v1973_v10 = vadd.f32 %v1972_v9, %v1971_v8  ;;  %v1974_v11 = vpop.f32.mrb[10].mxu0  ;;  %v2581_v12 = vpack.c.bf16 %v1156_v7, %v1155_v6 }
 0x232   : > { %v1975_v14 = vpop.f32.mrb[11].mxu0 }
 0x233   : > { %v1107_v15 = vadd.f32 %v1973_v10, %v2572_v51  ;;  %v1976_v16 = vadd.f32 %v1975_v14, %v1974_v11  ;;  %2088 = vmatmul.mubr.bf16.vlgmr.msra.gmra.mrb[0].mxu1 %v2581_v12 }
 0x234   : > { %2104 = vmatpush3.bf16.msra.mxu1 %v2248_v49 }
 0x235   : > { %v1110_v17 = vadd.f32 %v1976_v16, %v2572_v51  ;;  %2105 = vmatprep.subr.bf16.mxu1 %v2249_v13  ;;  %v1157_v19 = vmax.f32 %v1107_v15, 0.0 }
 0x237   : > { %v1158_v20 = vmax.f32 %v1110_v17, 0.0  ;;  %v1977_v21 = vpop.f32.mrb[12].mxu0 }
 0x238   : > { %v1978_v22 = vpop.f32.mrb[13].mxu0  ;;  %2106 = vmatpush3.bf16.msra.mxu1 %v2249_v13 }
 0x239   : > { %v1979_v23 = vadd.f32 %v1978_v22, %v1977_v21  ;;  %v1980_v24 = vpop.f32.mrb[14].mxu0  ;;  %v2592_v25 = vpack.c.bf16 %v1158_v20, %v1157_v19  ;;  %2107 = vmatprep.subr.bf16.mxu1 %v2250_v18 }
 0x23a   : > { %v1981_v27 = vpop.f32.mrb[15].mxu0 }
 0x23b   : > { %v1115_v28 = vadd.f32 %v1979_v23, %v2572_v51  ;;  %v1982_v29 = vadd.f32 %v1981_v27, %v1980_v24  ;;  %2091 = vmatprep.mubr.bf16.mxu1 %v2592_v25 }
 0x23c   : > { %2108 = vmatpush3.bf16.msra.mxu1 %v2250_v18 }
 0x23d   : > { %v1118_v30 = vadd.f32 %v1982_v29, %v2572_v51  ;;  %2109 = vmatprep.subr.bf16.mxu1 %v2251_v26  ;;  %v1159_v32 = vmax.f32 %v1115_v28, 0.0 }
 0x23f   : > { %v1160_v33 = vmax.f32 %v1118_v30, 0.0  ;;  %v1983_v34 = vpop.f32.mrb[16].mxu0 }
 0x240   : > { %v1984_v35 = vpop.f32.mrb[17].mxu0  ;;  %2110 = vmatpush3.bf16.msra.mxu1 %v2251_v26 }
 0x241   : > { %v1985_v36 = vadd.f32 %v1984_v35, %v1983_v34  ;;  %v1986_v37 = vpop.f32.mrb[18].mxu0  ;;  %v1172_v38 = vpack.c.bf16 %v1160_v33, %v1159_v32  ;;  %2111 = vmatprep.subr.bf16.mxu1 %v2252_v31 }
 0x242   : > { %v1987_v40 = vpop.f32.mrb[19].mxu0 }
 0x243   : > { %v1123_v41 = vadd.f32 %v1985_v36, %v2572_v51  ;;  %v1988_v42 = vadd.f32 %v1987_v40, %v1986_v37  ;;  %2092 = vmatmul.mubr.bf16.gmra.mrb[4].mxu1 %v1172_v38 }
 0x244   : > { %2112 = vmatpush3.bf16.msra.mxu1 %v2252_v31 }
 0x245   : > { %v1126_v43 = vadd.f32 %v1988_v42, %v2572_v51  ;;  %2113 = vmatprep.subr.bf16.mxu1 %v2253_v39  ;;  %v1161_v45 = vmax.f32 %v1123_v41, 0.0  ;;  %v1813_v42 = vld [vmem:[%s2678_s7] ss:$0 sm:$0xff] }
 0x247   : > { %v1162_v46 = vmax.f32 %v1126_v43, 0.0  ;;  %v1989_v47 = vpop.f32.mrb[20].mxu0 }
 0x248   : > { %v1990_v48 = vpop.f32.mrb[21].mxu0  ;;  %2114 = vmatpush3.bf16.msra.mxu1 %v2253_v39 }
 0x249   : > { %v1991_v49 = vadd.f32 %v1990_v48, %v1989_v47  ;;  %v1992_v50 = vpop.f32.mrb[22].mxu0  ;;  %v1173_v52 = vpack.c.bf16 %v1162_v46, %v1161_v45  ;;  %2115 = vmatprep.subr.bf16.mxu1 %v2254_v44 }
 0x24a   : > { %v1993_v54 = vpop.f32.mrb[23].mxu0 }
 0x24b   : > { %v1131_v55 = vadd.f32 %v1991_v49, %v2572_v51  ;;  %v1994_v56 = vadd.f32 %v1993_v54, %v1992_v50  ;;  %2095 = vmatprep.mubr.bf16.mxu1 %v1173_v52 }
 0x24c   : > { %2116 = vmatpush3.bf16.msra.mxu1 %v2254_v44 }
 0x24d   : > { %v1134_v57 = vadd.f32 %v1994_v56, %v2572_v51  ;;  %2117 = vmatprep.subr.bf16.mxu1 %v2255_v53  ;;  %v1163_v58 = vmax.f32 %v1131_v55, 0.0 }
 0x24f   : > { %v1164_v59 = vmax.f32 %v1134_v57, 0.0  ;;  %v1995_v60 = vpop.f32.mrb[24].mxu0 }
 0x250   : > { %v1996_v61 = vpop.f32.mrb[25].mxu0  ;;  %2118 = vmatpush3.bf16.msra.mxu1 %v2255_v53 }
 0x251   : > { %v1997_v62 = vadd.f32 %v1996_v61, %v1995_v60  ;;  %v1998_v63 = vpop.f32.mrb[26].mxu0  ;;  %v1174_v0 = vpack.c.bf16 %v1164_v59, %v1163_v58 }
 0x252   : > { %v1999_v2 = vpop.f32.mrb[27].mxu0 }
 0x253   : > { %v1139_v3 = vadd.f32 %v1997_v62, %v2572_v51  ;;  %v2000_v4 = vadd.f32 %v1999_v2, %v1998_v63  ;;  %2096 = vmatmul.mubr.bf16.gmra.mrb[8].mxu1 %v1174_v0 }
 0x255   : > { %v1142_v5 = vadd.f32 %v2000_v4, %v2572_v51  ;;  %v1165_v6 = vmax.f32 %v1139_v3, 0.0 }
 0x257   : > { %v1166_v7 = vmax.f32 %v1142_v5, 0.0  ;;  %v2001_v8 = vpop.f32.mrb[28].mxu0 }
 0x258   : > { %v2002_v9 = vpop.f32.mrb[29].mxu0 }
 0x259   : > { %v2003_v10 = vadd.f32 %v2002_v9, %v2001_v8  ;;  %v2004_v11 = vpop.f32.mrb[30].mxu0  ;;  %v1175_v13 = vpack.c.bf16 %v1166_v7, %v1165_v6 }
 0x25a   : > { %v2005_v14 = vpop.f32.mrb[31].mxu0 }
 0x25b   : > { %v1147_v15 = vadd.f32 %v2003_v10, %v2572_v51  ;;  %v2006_v16 = vadd.f32 %v2005_v14, %v2004_v11  ;;  %2099 = vmatprep.mubr.bf16.mxu1 %v1175_v13 }
 0x25d   : > { %v1150_v17 = vadd.f32 %v2006_v16, %v2572_v51  ;;  %v1167_v18 = vmax.f32 %v1147_v15, 0.0 }
 0x25f   : > { %v1168_v19 = vmax.f32 %v1150_v17, 0.0 }
 0x261   : > { %v1176_v20 = vpack.c.bf16 %v1168_v19, %v1167_v18 }
 0x263   : > { %2100 = vmatmul.mubr.bf16.gmra.mrb[12].mxu1 %v1176_v20 }
 0x264   : > { %2119 = vmatprep.mubr.bf16.mxu1 %v2576_v1 }
 0x26b   : > { %2120 = vmatmul.mubr.bf16.vlgmr.msra.gmra.mrb[16].mxu1 %v2581_v12 }
 0x26c   : > { %2123 = vmatprep.mubr.bf16.mxu1 %v2592_v25 }
 0x273   : > { %2124 = vmatmul.mubr.bf16.gmra.mrb[20].mxu1 %v1172_v38 }
 0x274   : > { %2127 = vmatprep.mubr.bf16.mxu1 %v1173_v52 }
 0x27b   : > { %2128 = vmatmul.mubr.bf16.gmra.mrb[24].mxu1 %v1174_v0 }
 0x27c   : > { %2131 = vmatprep.mubr.bf16.mxu1 %v1175_v13 }
 0x283   : > { %2132 = vmatmul.mubr.bf16.gmra.mrb[28].mxu1 %v1176_v20 }
 0x306   : > { %v2089_v51 = vpop.f32.mrb[0].mxu1 }
 0x307   : > { %v1275_v21 = vpop.f32.mrb[1].mxu1 }
 0x308   : > { %v2090_v22 = vpop.f32.mrb[2].mxu1 }
 0x309   : > { %v1881_v23 = vpack.c.bf16 %v2090_v22, %v2089_v51  ;;  %v1278_v24 = vpop.f32.mrb[3].mxu1 }
 0x30a   : > { %v1876_v26 = vpack.c.bf16 %v1278_v24, %v1275_v21 }
 0x30b   : > { %1920 = vst [vmem:[%s2459_s12 + $0x8] sm:$0xff] %v1881_v23  }
 0x30c   : > { %1877 = vst [vmem:[%s2459_s12] sm:$0xff] %v1876_v26  }
 0x316   : > { %v2093_v1 = vpop.f32.mrb[4].mxu1 }
 0x317   : > { %v1291_v12 = vpop.f32.mrb[5].mxu1 }
 0x318   : > { %v2094_v25 = vpop.f32.mrb[6].mxu1 }
 0x319   : > { %v1891_v27 = vpack.c.bf16 %v2094_v25, %v2093_v1  ;;  %v1294_v28 = vpop.f32.mrb[7].mxu1 }
 0x31a   : > { %v1886_v29 = vpack.c.bf16 %v1294_v28, %v1291_v12 }
 0x31b   : > { %1922 = vst [vmem:[%s2459_s12 + $0x18] sm:$0xff] %v1891_v27  }
 0x31c   : > { %1921 = vst [vmem:[%s2459_s12 + $0x10] sm:$0xff] %v1886_v29  }
 0x326   : > { %v2097_v30 = vpop.f32.mrb[8].mxu1 }
 0x327   : > { %v1307_v31 = vpop.f32.mrb[9].mxu1 }
 0x328   : > { %v2098_v32 = vpop.f32.mrb[10].mxu1 }
 0x329   : > { %v1901_v33 = vpack.c.bf16 %v2098_v32, %v2097_v30  ;;  %v1310_v34 = vpop.f32.mrb[11].mxu1 }
 0x32a   : > { %v1896_v35 = vpack.c.bf16 %v1310_v34, %v1307_v31 }
 0x32b   : > { %1924 = vst [vmem:[%s2459_s12 + $0x28] sm:$0xff] %v1901_v33  }
 0x32c   : > { %1923 = vst [vmem:[%s2459_s12 + $0x20] sm:$0xff] %v1896_v35  }
 0x336   : > { %v2101_v36 = vpop.f32.mrb[12].mxu1 }
 0x337   : > { %v1323_v37 = vpop.f32.mrb[13].mxu1 }
 0x338   : > { %v2102_v38 = vpop.f32.mrb[14].mxu1 }
 0x339   : > { %v1911_v39 = vpack.c.bf16 %v2102_v38, %v2101_v36  ;;  %v1326_v40 = vpop.f32.mrb[15].mxu1 }
 0x33a   : > { %v1906_v41 = vpack.c.bf16 %v1326_v40, %v1323_v37 }
 0x33b   : > { %1926 = vst [vmem:[%s2459_s12 + $0x38] sm:$0xff] %v1911_v39  }
 0x33c   : > { %1925 = vst [vmem:[%s2459_s12 + $0x30] sm:$0xff] %v1906_v41  }
 0x33e   : > { %v2121_v43 = vpop.f32.mrb[16].mxu1 }
 0x33f   : > { %v1532_v44 = vadd.f32 %v2121_v43, %v1813_v42  ;;  %v1523_v45 = vpop.f32.mrb[17].mxu1 }
 0x340   : > { %v1524_v46 = vadd.f32 %v1813_v42, %v1523_v45  ;;  %v2122_v47 = vpop.f32.mrb[18].mxu1 }
 0x341   : > { %1588 = vst [vmem:[%s2464_s14 + $0x10] sm:$0xff] %v1532_v44  ;;  %v1535_v48 = vadd.f32 %v2122_v47, %v1813_v42  ;;  %v1526_v49 = vpop.f32.mrb[19].mxu1 }
 0x342   : > { %1586 = vst [vmem:[%s2464_s14] sm:$0xff] %v1524_v46  ;;  %v1527_v50 = vadd.f32 %v1813_v42, %v1526_v49 }
 0x343   : > { %1589 = vst [vmem:[%s2464_s14 + $0x18] sm:$0xff] %v1535_v48 }
 0x344   : > { %1587 = vst [vmem:[%s2464_s14 + $0x8] sm:$0xff] %v1527_v50 }
 0x346   : > { %v2125_v52 = vpop.f32.mrb[20].mxu1 }
 0x347   : > { %v1548_v53 = vadd.f32 %v2125_v52, %v1813_v42  ;;  %v1539_v54 = vpop.f32.mrb[21].mxu1 }
 0x348   : > { %v1540_v55 = vadd.f32 %v1813_v42, %v1539_v54  ;;  %v2126_v56 = vpop.f32.mrb[22].mxu1 }
 0x349   : > { %1592 = vst [vmem:[%s2464_s14 + $0x30] sm:$0xff] %v1548_v53  ;;  %v1551_v57 = vadd.f32 %v2126_v56, %v1813_v42  ;;  %v1542_v58 = vpop.f32.mrb[23].mxu1 }
 0x34a   : > { %1590 = vst [vmem:[%s2464_s14 + $0x20] sm:$0xff] %v1540_v55  ;;  %v1543_v59 = vadd.f32 %v1813_v42, %v1542_v58 }
 0x34b   : > { %1593 = vst [vmem:[%s2464_s14 + $0x38] sm:$0xff] %v1551_v57 }
 0x34c   : > { %1591 = vst [vmem:[%s2464_s14 + $0x28] sm:$0xff] %v1543_v59 }
 0x34e   : > { %v2129_v60 = vpop.f32.mrb[24].mxu1 }
 0x34f   : > { %v1564_v61 = vadd.f32 %v2129_v60, %v1813_v42  ;;  %v1555_v62 = vpop.f32.mrb[25].mxu1 }
 0x350   : > { %v1556_v63 = vadd.f32 %v1813_v42, %v1555_v62  ;;  %v2130_v0 = vpop.f32.mrb[26].mxu1 }
 0x351   : > { %1596 = vst [vmem:[%s2464_s14 + $0x50] sm:$0xff] %v1564_v61  ;;  %v1567_v2 = vadd.f32 %v2130_v0, %v1813_v42  ;;  %v1558_v3 = vpop.f32.mrb[27].mxu1 }
 0x352   : > { %1594 = vst [vmem:[%s2464_s14 + $0x40] sm:$0xff] %v1556_v63  ;;  %v1559_v4 = vadd.f32 %v1813_v42, %v1558_v3 }
 0x353   : > { %1597 = vst [vmem:[%s2464_s14 + $0x58] sm:$0xff] %v1567_v2 }
 0x354   : > { %1595 = vst [vmem:[%s2464_s14 + $0x48] sm:$0xff] %v1559_v4 }
 0x356   : > { %v2133_v5 = vpop.f32.mrb[28].mxu1 }
 0x357   : > { %v1580_v6 = vadd.f32 %v2133_v5, %v1813_v42  ;;  %v1571_v7 = vpop.f32.mrb[29].mxu1 }
 0x358   : > { %v1572_v8 = vadd.f32 %v1813_v42, %v1571_v7  ;;  %v2134_v9 = vpop.f32.mrb[30].mxu1 }
 0x359   : > { %1600 = vst [vmem:[%s2464_s14 + $0x70] sm:$0xff] %v1580_v6  ;;  %v1583_v10 = vadd.f32 %v2134_v9, %v1813_v42  ;;  %v1574_v11 = vpop.f32.mrb[31].mxu1 }
 0x35a   : > { %1598 = vst [vmem:[%s2464_s14 + $0x60] sm:$0xff] %v1572_v8  ;;  %v1575_v13 = vadd.f32 %v1813_v42, %v1574_v11 }
 0x35b   : > { %1601 = vst [vmem:[%s2464_s14 + $0x78] sm:$0xff] %v1583_v10 }
 0x35c   : > { %1599 = vst [vmem:[%s2464_s14 + $0x68] sm:$0xff] %v1575_v13 }
 0x35d PF: > { %s20_s15 = sadd.s32 1, %s2310_s15   ;;  %s2689_s12 = sld [smem:[#allocation4_spill]] }
 0x35e   : > { %p17_p0 = scmp.ge.s32.totalorder %s20_s15, 6   ;;  %s2690_s24 = sld [smem:[#allocation5_spill]] }
 0x35f   : > { %s2691_s14 = sld [smem:[#allocation6_spill]]  ;;  %s2692_s30 = smov %s2290_s10 }
 0x360   : > { %s2693_s10 = smov %s2414_s22  ;;  %s2694_s11 = smov %s2302_s13 }
 0x361   :  { %19 = sbr.rel (!%p17_p0) target bundleno = 6 (0x6), region = 154 }
 0x364   : > { %s2695_s13 = smov %s2690_s24 }

</bundles_post_ra>
